<compile_context>
chip_gen: v5e
topology: v5e:2x2
jax: 0.10.0
libtpu: 0.0.40
codegen_flags: <defaults>
</compile_context>

<pallas_src>
import math
import functools

import jax
import jax.numpy as jnp
from jax.experimental import pallas as pl
from jax.experimental.pallas import tpu as pltpu


# ---------------------------------------------------------------------------
# Kernel
# ---------------------------------------------------------------------------
def _layer_norm(x, gamma, beta, eps=1e-5):
    mu = jnp.mean(x, axis=-1, keepdims=True)
    var = jnp.mean((x - mu) ** 2, axis=-1, keepdims=True)
    return (x - mu) * jax.lax.rsqrt(var + eps) * gamma + beta


def decoder_layer_kernel(
        # per-batch activation tiles
        tgt_ref, mem_ref,
        # self-attention params (QKV fused, query scale folded into Q columns)
        sa_wqkv, sa_bqkv, sa_wo, sa_bo,
        # cross-attention params (KV fused, query scale folded into ca_wq/bq)
        ca_wq, ca_bq, ca_wkv, ca_bkv, ca_wo, ca_bo,
        # feed-forward params
        w1, b1, w2, b2,
        # layer norms
        g1, be1, g2, be2, g3, be3,
        # output
        out_ref,
        *, nhead):
    f32, bf16 = jnp.float32, jnp.bfloat16
    D = tgt_ref.shape[-1]
    hd = D // nhead

    tgt = tgt_ref[...].astype(f32)   # (T, D) f32 for residual / LayerNorm
    mem_bf = mem_ref[...]            # (S, D) already bf16 (cast host-side)

    def mha(q, k, v, wo_ref, bo_ref):
        """q: (Tq, D) f32 (already scaled), k/v: (Tk, D) f32 -> (Tq, D) f32."""
        # one whole-array bf16 cast per operand; per-head slices below are
        # cheap lane selects of already-bf16 data.
        qb = q.astype(bf16)
        kb = k.astype(bf16)
        vb = v.astype(bf16)
        ohs = []
        for h in range(nhead):                       # nhead static -> unrolled
            sl = slice(h * hd, (h + 1) * hd)
            # scores contract the last dim of both operands (MXU "NT" form)
            s = jax.lax.dot_general(qb[:, sl], kb[:, sl],
                                    (((1,), (1,)), ((), ())),
                                    preferred_element_type=f32)
            s = s - jnp.max(s, axis=-1, keepdims=True)
            p = jnp.exp(s)
            p = p * pl.reciprocal(jnp.sum(p, axis=-1, keepdims=True),
                                  approx=True)
            ohs.append(jnp.dot(p.astype(bf16), vb[:, sl],
                               preferred_element_type=f32))
        # head outputs stay in registers; single lane-concat, no VMEM scratch.
        attn = jnp.concatenate(ohs, axis=-1).astype(bf16)       # (Tq, D)
        return jnp.dot(attn, wo_ref[...],
                       preferred_element_type=f32) + bo_ref[...]

    # ---- self attention block (q = k = value-source = tgt) ----
    qkv = jnp.dot(tgt.astype(bf16), sa_wqkv[...],
                  preferred_element_type=f32) + sa_bqkv[...]
    tgt2 = mha(qkv[:, 0:D], qkv[:, D:2 * D], qkv[:, 2 * D:3 * D], sa_wo, sa_bo)
    x = _layer_norm(tgt + tgt2, g1[...], be1[...])        # dropout1 == id

    # ---- cross attention block (query = x, key = value-source = memory) ----
    q = jnp.dot(x.astype(bf16), ca_wq[...],
                preferred_element_type=f32) + ca_bq[...]
    kv = jnp.dot(mem_bf, ca_wkv[...],
                 preferred_element_type=f32) + ca_bkv[...]
    tgt2 = mha(q, kv[:, 0:D], kv[:, D:2 * D], ca_wo, ca_bo)
    x = _layer_norm(x + tgt2, g2[...], be2[...])          # dropout2 == id

    # ---- feed forward block (relu) ----
    h = jnp.dot(x.astype(bf16), w1[...], preferred_element_type=f32) + b1[...]
    h = jnp.maximum(h, 0.0)                               # dropout == id
    tgt2 = jnp.dot(h.astype(bf16), w2[...],
                   preferred_element_type=f32) + b2[...]
    x = _layer_norm(x + tgt2, g3[...], be3[...])          # dropout3 == id

    out_ref[...] = x.astype(out_ref.dtype)


# ---------------------------------------------------------------------------
# One-time parameter preparation (fusion, bf16 cast, scale folding)
# ---------------------------------------------------------------------------
def prepare_params(params, nhead):
    """Fold raw f32 params into the fused bf16 kernel layout.  Call ONCE at
    module construction; the per-call path then only DMAs these arrays."""
    (sa_wq, sa_wk, sa_wv, sa_bq, sa_bk, sa_bv, sa_wo, sa_bo,
     ca_wq, ca_wk, ca_wv, ca_bq, ca_bk, ca_bv, ca_wo, ca_bo,
     w1, b1, w2, b2, g1, be1, g2, be2, g3, be3) = params
    d_model = sa_wq.shape[0]
    assert d_model % nhead == 0
    scale = 1.0 / math.sqrt(d_model // nhead)
    bf = lambda w: w.astype(jnp.bfloat16)
    return (
        bf(jnp.concatenate([sa_wq * scale, sa_wk, sa_wv], axis=1)),  # (D, 3D)
        jnp.concatenate([sa_bq * scale, sa_bk, sa_bv], axis=1),      # (1, 3D)
        bf(sa_wo), sa_bo,
        bf(ca_wq * scale), ca_bq * scale,
        bf(jnp.concatenate([ca_wk, ca_wv], axis=1)),                 # (D, 2D)
        jnp.concatenate([ca_bk, ca_bv], axis=1),                     # (1, 2D)
        bf(ca_wo), ca_bo,
        bf(w1), b1, bf(w2), b2,
        g1, be1, g2, be2, g3, be3,
    )


# ---------------------------------------------------------------------------
# Build-time capability / hardware queries (resolved once, cached)
# ---------------------------------------------------------------------------
@functools.lru_cache(maxsize=1)
def _single_buffer_supported():
    """Probe once whether pipeline_mode=pl.Buffered(1) (single-buffered
    grid-invariant operands) lowers/compiles on this JAX + TPU."""
    if not hasattr(pl, "Buffered"):
        return False

    def _copy(x_ref, o_ref):
        o_ref[...] = x_ref[...]

    try:
        fn = pl.pallas_call(
            _copy,
            out_shape=jax.ShapeDtypeStruct((8, 128), jnp.float32),
            grid=(1,),
            in_specs=[pl.BlockSpec((8, 128), lambda i: (0, 0),
                                   pipeline_mode=pl.Buffered(1))],
            out_specs=pl.BlockSpec((8, 128), lambda i: (0, 0)))
        jax.jit(fn).lower(
            jax.ShapeDtypeStruct((8, 128), jnp.float32)).compile()
        return True
    except Exception:
        return False


@functools.lru_cache(maxsize=1)
def _vmem_limit_bytes():
    """~75% of this generation's VMEM (v5e/v6e -> ~96 MiB, v7x -> ~48 MiB)."""
    try:
        cap = int(pltpu.get_tpu_info().vmem_capacity_bytes)
    except Exception:
        cap = 128 * 1024 * 1024
    return max(32 * 1024 * 1024, min(int(cap * 0.75), 112 * 1024 * 1024))


def _param_spec(p, single_buffer):
    n = p.ndim

    def index_map(b):
        return (0,) * n

    if single_buffer:
        # grid-invariant params -> single buffer (halves weight VMEM)
        return pl.BlockSpec(p.shape, index_map, pipeline_mode=pl.Buffered(1))
    return pl.BlockSpec(p.shape, index_map)


# ---------------------------------------------------------------------------
# Wrapper
# ---------------------------------------------------------------------------
@functools.partial(jax.jit, static_argnums=(3, 4))
def _decoder_layer_call(tgt, memory, kparams, nhead, single_buffer):
    B, T, D = tgt.shape
    _, S, _ = memory.shape
    assert D % nhead == 0
    FF = kparams[10].shape[1]

    # memory is only consumed at MXU inputs -> DMA it as bf16 (half the bytes)
    mem_bf = memory.astype(jnp.bfloat16)

    # advisory cost estimate for XLA scheduling
    flops_b = (2 * T * D * 3 * D + 4 * T * T * D + 2 * T * D * D       # self
               + 2 * T * D * D + 4 * S * D * D + 4 * T * S * D         # cross
               + 2 * T * D * D
               + 4 * T * D * FF)                                       # FFN
    param_bytes = sum(int(p.size) * p.dtype.itemsize for p in kparams)
    cost = pl.CostEstimate(
        flops=int(B * flops_b),
        transcendentals=int(B * nhead * T * (T + S)),
        bytes_accessed=int(2 * B * T * D * 4 + B * S * D * 2 + param_bytes))

    in_specs = [
        pl.BlockSpec((None, T, D), lambda b: (b, 0, 0)),   # tgt tile (f32)
        pl.BlockSpec((None, S, D), lambda b: (b, 0, 0)),   # memory tile (bf16)
    ] + [_param_spec(p, single_buffer) for p in kparams]
    out_spec = pl.BlockSpec((None, T, D), lambda b: (b, 0, 0))

    return pl.pallas_call(
        functools.partial(decoder_layer_kernel, nhead=nhead),
        out_shape=jax.ShapeDtypeStruct((B, T, D), tgt.dtype),
        grid_spec=pltpu.PrefetchScalarGridSpec(
            num_scalar_prefetch=0,
            grid=(B,),
            in_specs=in_specs,
            out_specs=out_spec),
        compiler_params=pltpu.CompilerParams(
            dimension_semantics=("parallel",),
            vmem_limit_bytes=_vmem_limit_bytes()),
        cost_estimate=cost,
    )(tgt, mem_bf, *kparams)


def transformer_decoder_layer(tgt, memory, kparams, nhead):
    """tgt: (B, T, D) f32, memory: (B, S, D); kparams from prepare_params().
    No host sync here -- caller decides when to block."""
    return _decoder_layer_call(tgt, memory, tuple(kparams), nhead,
                               _single_buffer_supported())


# ---------------------------------------------------------------------------
# Deterministic parameter init + pure-JAX reference
# ---------------------------------------------------------------------------
def init_params(key, d_model, nhead, dim_ff):
    ks = jax.random.split(key, 16)
    s = 0.05

    def mat(k, shape):
        return jax.random.normal(k, shape, jnp.float32) * s

    # weights already transposed so that projection is x @ W + b
    sa_wq, sa_wk, sa_wv = (mat(ks[0], (d_model, d_model)),
                           mat(ks[1], (d_model, d_model)),
                           mat(ks[2], (d_model, d_model)))
    sa_bq, sa_bk, sa_bv = (mat(ks[3], (1, d_model)), mat(ks[4], (1, d_model)),
                           mat(ks[5], (1, d_model)))
    sa_wo, sa_bo = mat(ks[6], (d_model, d_model)), mat(ks[7], (1, d_model))
    ca_wq, ca_wk, ca_wv = (mat(ks[8], (d_model, d_model)),
                           mat(ks[9], (d_model, d_model)),
                           mat(ks[10], (d_model, d_model)))
    ca_bq, ca_bk, ca_bv = (mat(ks[11], (1, d_model)), mat(ks[12], (1, d_model)),
                           mat(ks[13], (1, d_model)))
    ca_wo, ca_bo = mat(ks[14], (d_model, d_model)), mat(ks[15], (1, d_model))
    k2 = jax.random.split(jax.random.fold_in(key, 99), 4)
    w1, b1 = mat(k2[0], (d_model, dim_ff)), mat(k2[1], (1, dim_ff))
    w2, b2 = mat(k2[2], (dim_ff, d_model)), mat(k2[3], (1, d_model))
    ones = jnp.ones((1, d_model), jnp.float32)
    zeros = jnp.zeros((1, d_model), jnp.float32)
    return [sa_wq, sa_wk, sa_wv, sa_bq, sa_bk, sa_bv, sa_wo, sa_bo,
            ca_wq, ca_wk, ca_wv, ca_bq, ca_bk, ca_bv, ca_wo, ca_bo,
            w1, b1, w2, b2,
            ones, zeros, ones, zeros, ones, zeros]


def reference(tgt, memory, params, nhead):
    """Pure-JAX forward_post reference.  Matmul inputs are cast to bf16 with
    f32 accumulation to mirror the kernel's MXU precision policy; softmax,
    residual adds and LayerNorm are f32, exactly like the kernel."""
    (sa_wq, sa_wk, sa_wv, sa_bq, sa_bk, sa_bv, sa_wo, sa_bo,
     ca_wq, ca_wk, ca_wv, ca_bq, ca_bk, ca_bv, ca_wo, ca_bo,
     w1, b1, w2, b2, g1, be1, g2, be2, g3, be3) = params
    f32, bf16 = jnp.float32, jnp.bfloat16

    def bmm(a, w):
        return jnp.einsum('...d,df->...f', a.astype(bf16), w.astype(bf16),
                          preferred_element_type=f32)

    def ln(x, g, b):
        mu = jnp.mean(x, -1, keepdims=True)
        var = jnp.mean((x - mu) ** 2, -1, keepdims=True)
        return (x - mu) / jnp.sqrt(var + 1e-5) * g + b

    def mha(q_in, k_in, v_in, wq, bq, wk, bk, wv, bv, wo, bo):
        B, Tq, D = q_in.shape
        Tk = k_in.shape[1]
        hd = D // nhead
        q = (bmm(q_in, wq) + bq) * (1.0 / math.sqrt(hd))
        k = bmm(k_in, wk) + bk
        v = bmm(v_in, wv) + bv
        q = q.reshape(B, Tq, nhead, hd).transpose(0, 2, 1, 3)
        k = k.reshape(B, Tk, nhead, hd).transpose(0, 2, 1, 3)
        v = v.reshape(B, Tk, nhead, hd).transpose(0, 2, 1, 3)
        s = jnp.einsum('bhqd,bhkd->bhqk', q.astype(bf16), k.astype(bf16),
                       preferred_element_type=f32)
        p = jax.nn.softmax(s, axis=-1)
        o = jnp.einsum('bhqk,bhkd->bhqd', p.astype(bf16), v.astype(bf16),
                       preferred_element_type=f32)
        o = o.transpose(0, 2, 1, 3).reshape(B, Tq, D)
        return bmm(o, wo) + bo

    x = tgt
    x = ln(x + mha(x, x, x, sa_wq, sa_bq, sa_wk, sa_bk, sa_wv, sa_bv,
                   sa_wo, sa_bo), g1, be1)
    x = ln(x + mha(x, memory, memory, ca_wq, ca_bq, ca_wk, ca_bk, ca_wv, ca_bv,
                   ca_wo, ca_bo), g2, be2)
    h = jnp.maximum(bmm(x, w1) + b1, 0.0)
    x = ln(x + (bmm(h, w2) + b2), g3, be3)
    return x


# ---------------------------------------------------------------------------
if __name__ == "__main__":
    # lane-dense test config: D = 128 (one full lane width), hd = 32
    B, T, S, D, NHEAD, FF = 2, 8, 16, 128, 4, 256

    key = jax.random.PRNGKey(0)
    k_tgt, k_mem, k_par = jax.random.split(key, 3)
    tgt = jax.random.normal(k_tgt, (B, T, D), jnp.float32)
    memory = jax.random.normal(k_mem, (B, S, D), jnp.float32)
    params = init_params(k_par, D, NHEAD, FF)

    # one-time weight fusion / bf16 cast / scale folding (not per-call)
    kparams = prepare_params(params, NHEAD)
    kparams = jax.block_until_ready(kparams)

    out = transformer_decoder_layer(tgt, memory, kparams, NHEAD)
    out = jax.block_until_ready(out)

    ref = reference(tgt, memory, params, NHEAD)
    assert out.shape == (B, T, D)
    err = float(jnp.max(jnp.abs(out - ref)))
    assert jnp.allclose(out, ref, atol=1e-2, rtol=1e-2), f"max err {err}"

    print("KERNEL_OK")
</pallas_src>

<mosaic_0001>
module attributes {stable_mosaic.version = 11 : i64} {
  func.func @decoder_layer_kernel(%arg0: i32, %arg1: memref<1x8x128xf32, #tpu.memory_space<vmem>>, %arg2: memref<1x16x128xbf16, #tpu.memory_space<vmem>>, %arg3: memref<128x384xbf16, #tpu.memory_space<vmem>>, %arg4: memref<1x384xf32, #tpu.memory_space<vmem>>, %arg5: memref<128x128xbf16, #tpu.memory_space<vmem>>, %arg6: memref<1x128xf32, #tpu.memory_space<vmem>>, %arg7: memref<128x128xbf16, #tpu.memory_space<vmem>>, %arg8: memref<1x128xf32, #tpu.memory_space<vmem>>, %arg9: memref<128x256xbf16, #tpu.memory_space<vmem>>, %arg10: memref<1x256xf32, #tpu.memory_space<vmem>>, %arg11: memref<128x128xbf16, #tpu.memory_space<vmem>>, %arg12: memref<1x128xf32, #tpu.memory_space<vmem>>, %arg13: memref<128x256xbf16, #tpu.memory_space<vmem>>, %arg14: memref<1x256xf32, #tpu.memory_space<vmem>>, %arg15: memref<256x128xbf16, #tpu.memory_space<vmem>>, %arg16: memref<1x128xf32, #tpu.memory_space<vmem>>, %arg17: memref<1x128xf32, #tpu.memory_space<vmem>>, %arg18: memref<1x128xf32, #tpu.memory_space<vmem>>, %arg19: memref<1x128xf32, #tpu.memory_space<vmem>>, %arg20: memref<1x128xf32, #tpu.memory_space<vmem>>, %arg21: memref<1x128xf32, #tpu.memory_space<vmem>>, %arg22: memref<1x128xf32, #tpu.memory_space<vmem>>, %arg23: memref<1x8x128xf32, #tpu.memory_space<vmem>>) attributes {dimension_semantics = [#tpu.dimension_semantics<parallel>], iteration_bounds = array<i64: 2>, scalar_prefetch = 0 : i64, scratch_operands = 0 : i64, tpu.core_type = #tpu.core_type<tc>, window_params = [{transform_indices = @transform_0, window_bounds = array<i64: 1, 8, 128>}, {transform_indices = @transform_1, window_bounds = array<i64: 1, 16, 128>}, {pipeline_mode = #tpu.pipeline_mode<synchronous>, transform_indices = @transform_2, window_bounds = array<i64: 128, 384>}, {pipeline_mode = #tpu.pipeline_mode<synchronous>, transform_indices = @transform_3, window_bounds = array<i64: 1, 384>}, {pipeline_mode = #tpu.pipeline_mode<synchronous>, transform_indices = @transform_4, window_bounds = array<i64: 128, 128>}, {pipeline_mode = #tpu.pipeline_mode<synchronous>, transform_indices = @transform_5, window_bounds = array<i64: 1, 128>}, {pipeline_mode = #tpu.pipeline_mode<synchronous>, transform_indices = @transform_6, window_bounds = array<i64: 128, 128>}, {pipeline_mode = #tpu.pipeline_mode<synchronous>, transform_indices = @transform_7, window_bounds = array<i64: 1, 128>}, {pipeline_mode = #tpu.pipeline_mode<synchronous>, transform_indices = @transform_8, window_bounds = array<i64: 128, 256>}, {pipeline_mode = #tpu.pipeline_mode<synchronous>, transform_indices = @transform_9, window_bounds = array<i64: 1, 256>}, {pipeline_mode = #tpu.pipeline_mode<synchronous>, transform_indices = @transform_10, window_bounds = array<i64: 128, 128>}, {pipeline_mode = #tpu.pipeline_mode<synchronous>, transform_indices = @transform_11, window_bounds = array<i64: 1, 128>}, {pipeline_mode = #tpu.pipeline_mode<synchronous>, transform_indices = @transform_12, window_bounds = array<i64: 128, 256>}, {pipeline_mode = #tpu.pipeline_mode<synchronous>, transform_indices = @transform_13, window_bounds = array<i64: 1, 256>}, {pipeline_mode = #tpu.pipeline_mode<synchronous>, transform_indices = @transform_14, window_bounds = array<i64: 256, 128>}, {pipeline_mode = #tpu.pipeline_mode<synchronous>, transform_indices = @transform_15, window_bounds = array<i64: 1, 128>}, {pipeline_mode = #tpu.pipeline_mode<synchronous>, transform_indices = @transform_16, window_bounds = array<i64: 1, 128>}, {pipeline_mode = #tpu.pipeline_mode<synchronous>, transform_indices = @transform_17, window_bounds = array<i64: 1, 128>}, {pipeline_mode = #tpu.pipeline_mode<synchronous>, transform_indices = @transform_18, window_bounds = array<i64: 1, 128>}, {pipeline_mode = #tpu.pipeline_mode<synchronous>, transform_indices = @transform_19, window_bounds = array<i64: 1, 128>}, {pipeline_mode = #tpu.pipeline_mode<synchronous>, transform_indices = @transform_20, window_bounds = array<i64: 1, 128>}, {pipeline_mode = #tpu.pipeline_mode<synchronous>, transform_indices = @transform_21, window_bounds = array<i64: 1, 128>}, {transform_indices = @transform_22, window_bounds = array<i64: 1, 8, 128>}]} {
    %c0 = arith.constant 0 : index
    %c0_0 = arith.constant 0 : index
    %c0_1 = arith.constant 0 : index
    %0 = vector.load %arg1[%c0, %c0_0, %c0_1] : memref<1x8x128xf32, #tpu.memory_space<vmem>>, vector<1x8x128xf32>
    %1 = vector.shape_cast %0 : vector<1x8x128xf32> to vector<8x128xf32>
    %c0_2 = arith.constant 0 : index
    %c0_3 = arith.constant 0 : index
    %c0_4 = arith.constant 0 : index
    %2 = vector.load %arg2[%c0_2, %c0_3, %c0_4] : memref<1x16x128xbf16, #tpu.memory_space<vmem>>, vector<1x16x128xbf16>
    %3 = vector.shape_cast %2 : vector<1x16x128xbf16> to vector<16x128xbf16>
    %4 = arith.truncf %1 : vector<8x128xf32> to vector<8x128xbf16>
    %c0_5 = arith.constant 0 : index
    %c0_6 = arith.constant 0 : index
    %5 = vector.load %arg3[%c0_5, %c0_6] : memref<128x384xbf16, #tpu.memory_space<vmem>>, vector<128x384xbf16>
    %cst = arith.constant dense<0.000000e+00> : vector<8x384xf32>
    %6 = tpu.matmul %4, %5, %cst {dimension_numbers = #tpu.dot_dimension_numbers<[1], [0], [0], [1], [0, 0, 1, 1], [], []>} : vector<8x128xbf16>, vector<128x384xbf16>, vector<8x384xf32> -> vector<8x384xf32>
    %c0_7 = arith.constant 0 : index
    %c0_8 = arith.constant 0 : index
    %7 = vector.load %arg4[%c0_7, %c0_8] : memref<1x384xf32, #tpu.memory_space<vmem>>, vector<1x384xf32>
    %8 = vector.broadcast %7 : vector<1x384xf32> to vector<8x384xf32>
    %9 = arith.addf %6, %8 : vector<8x384xf32>
    %10 = vector.extract_strided_slice %9 {offsets = [0, 0], sizes = [8, 128], strides = [1, 1]} : vector<8x384xf32> to vector<8x128xf32>
    %11 = vector.extract_strided_slice %9 {offsets = [0, 128], sizes = [8, 128], strides = [1, 1]} : vector<8x384xf32> to vector<8x128xf32>
    %12 = vector.extract_strided_slice %9 {offsets = [0, 256], sizes = [8, 128], strides = [1, 1]} : vector<8x384xf32> to vector<8x128xf32>
    %13 = arith.truncf %10 : vector<8x128xf32> to vector<8x128xbf16>
    %14 = arith.truncf %11 : vector<8x128xf32> to vector<8x128xbf16>
    %15 = arith.truncf %12 : vector<8x128xf32> to vector<8x128xbf16>
    %16 = vector.extract_strided_slice %13 {offsets = [0, 0], sizes = [8, 32], strides = [1, 1]} : vector<8x128xbf16> to vector<8x32xbf16>
    %17 = vector.extract_strided_slice %14 {offsets = [0, 0], sizes = [8, 32], strides = [1, 1]} : vector<8x128xbf16> to vector<8x32xbf16>
    %cst_9 = arith.constant dense<0.000000e+00> : vector<8x8xf32>
    %18 = tpu.matmul %16, %17, %cst_9 {dimension_numbers = #tpu.dot_dimension_numbers<[1], [1], [0], [0], [0, 0, 1, 0], [], []>} : vector<8x32xbf16>, vector<8x32xbf16>, vector<8x8xf32> -> vector<8x8xf32>
    %cst_10 = arith.constant dense<0xFF800000> : vector<8xf32>
    %19 = vector.multi_reduction <maximumf>, %18, %cst_10 [1] : vector<8x8xf32> to vector<8xf32>
    %20 = vector.shape_cast %19 : vector<8xf32> to vector<8x1xf32>
    %21 = vector.broadcast %20 : vector<8x1xf32> to vector<8x8xf32>
    %22 = arith.subf %18, %21 : vector<8x8xf32>
    %23 = math.exp %22 : vector<8x8xf32>
    %cst_11 = arith.constant dense<0.000000e+00> : vector<8xf32>
    %24 = vector.multi_reduction <add>, %23, %cst_11 [1] : vector<8x8xf32> to vector<8xf32>
    %25 = vector.shape_cast %24 : vector<8xf32> to vector<8x1xf32>
    %26 = tpu.reciprocal %25 {approx = true} : vector<8x1xf32> -> vector<8x1xf32>
    %27 = vector.broadcast %26 : vector<8x1xf32> to vector<8x8xf32>
    %28 = arith.mulf %23, %27 : vector<8x8xf32>
    %29 = arith.truncf %28 : vector<8x8xf32> to vector<8x8xbf16>
    %30 = vector.extract_strided_slice %15 {offsets = [0, 0], sizes = [8, 32], strides = [1, 1]} : vector<8x128xbf16> to vector<8x32xbf16>
    %cst_12 = arith.constant dense<0.000000e+00> : vector<8x32xf32>
    %31 = tpu.matmul %29, %30, %cst_12 {dimension_numbers = #tpu.dot_dimension_numbers<[1], [0], [0], [1], [0, 0, 1, 1], [], []>} : vector<8x8xbf16>, vector<8x32xbf16>, vector<8x32xf32> -> vector<8x32xf32>
    %32 = vector.extract_strided_slice %13 {offsets = [0, 32], sizes = [8, 32], strides = [1, 1]} : vector<8x128xbf16> to vector<8x32xbf16>
    %33 = vector.extract_strided_slice %14 {offsets = [0, 32], sizes = [8, 32], strides = [1, 1]} : vector<8x128xbf16> to vector<8x32xbf16>
    %cst_13 = arith.constant dense<0.000000e+00> : vector<8x8xf32>
    %34 = tpu.matmul %32, %33, %cst_13 {dimension_numbers = #tpu.dot_dimension_numbers<[1], [1], [0], [0], [0, 0, 1, 0], [], []>} : vector<8x32xbf16>, vector<8x32xbf16>, vector<8x8xf32> -> vector<8x8xf32>
    %cst_14 = arith.constant dense<0xFF800000> : vector<8xf32>
    %35 = vector.multi_reduction <maximumf>, %34, %cst_14 [1] : vector<8x8xf32> to vector<8xf32>
    %36 = vector.shape_cast %35 : vector<8xf32> to vector<8x1xf32>
    %37 = vector.broadcast %36 : vector<8x1xf32> to vector<8x8xf32>
    %38 = arith.subf %34, %37 : vector<8x8xf32>
    %39 = math.exp %38 : vector<8x8xf32>
    %cst_15 = arith.constant dense<0.000000e+00> : vector<8xf32>
    %40 = vector.multi_reduction <add>, %39, %cst_15 [1] : vector<8x8xf32> to vector<8xf32>
    %41 = vector.shape_cast %40 : vector<8xf32> to vector<8x1xf32>
    %42 = tpu.reciprocal %41 {approx = true} : vector<8x1xf32> -> vector<8x1xf32>
    %43 = vector.broadcast %42 : vector<8x1xf32> to vector<8x8xf32>
    %44 = arith.mulf %39, %43 : vector<8x8xf32>
    %45 = arith.truncf %44 : vector<8x8xf32> to vector<8x8xbf16>
    %46 = vector.extract_strided_slice %15 {offsets = [0, 32], sizes = [8, 32], strides = [1, 1]} : vector<8x128xbf16> to vector<8x32xbf16>
    %cst_16 = arith.constant dense<0.000000e+00> : vector<8x32xf32>
    %47 = tpu.matmul %45, %46, %cst_16 {dimension_numbers = #tpu.dot_dimension_numbers<[1], [0], [0], [1], [0, 0, 1, 1], [], []>} : vector<8x8xbf16>, vector<8x32xbf16>, vector<8x32xf32> -> vector<8x32xf32>
    %48 = vector.extract_strided_slice %13 {offsets = [0, 64], sizes = [8, 32], strides = [1, 1]} : vector<8x128xbf16> to vector<8x32xbf16>
    %49 = vector.extract_strided_slice %14 {offsets = [0, 64], sizes = [8, 32], strides = [1, 1]} : vector<8x128xbf16> to vector<8x32xbf16>
    %cst_17 = arith.constant dense<0.000000e+00> : vector<8x8xf32>
    %50 = tpu.matmul %48, %49, %cst_17 {dimension_numbers = #tpu.dot_dimension_numbers<[1], [1], [0], [0], [0, 0, 1, 0], [], []>} : vector<8x32xbf16>, vector<8x32xbf16>, vector<8x8xf32> -> vector<8x8xf32>
    %cst_18 = arith.constant dense<0xFF800000> : vector<8xf32>
    %51 = vector.multi_reduction <maximumf>, %50, %cst_18 [1] : vector<8x8xf32> to vector<8xf32>
    %52 = vector.shape_cast %51 : vector<8xf32> to vector<8x1xf32>
    %53 = vector.broadcast %52 : vector<8x1xf32> to vector<8x8xf32>
    %54 = arith.subf %50, %53 : vector<8x8xf32>
    %55 = math.exp %54 : vector<8x8xf32>
    %cst_19 = arith.constant dense<0.000000e+00> : vector<8xf32>
    %56 = vector.multi_reduction <add>, %55, %cst_19 [1] : vector<8x8xf32> to vector<8xf32>
    %57 = vector.shape_cast %56 : vector<8xf32> to vector<8x1xf32>
    %58 = tpu.reciprocal %57 {approx = true} : vector<8x1xf32> -> vector<8x1xf32>
    %59 = vector.broadcast %58 : vector<8x1xf32> to vector<8x8xf32>
    %60 = arith.mulf %55, %59 : vector<8x8xf32>
    %61 = arith.truncf %60 : vector<8x8xf32> to vector<8x8xbf16>
    %62 = vector.extract_strided_slice %15 {offsets = [0, 64], sizes = [8, 32], strides = [1, 1]} : vector<8x128xbf16> to vector<8x32xbf16>
    %cst_20 = arith.constant dense<0.000000e+00> : vector<8x32xf32>
    %63 = tpu.matmul %61, %62, %cst_20 {dimension_numbers = #tpu.dot_dimension_numbers<[1], [0], [0], [1], [0, 0, 1, 1], [], []>} : vector<8x8xbf16>, vector<8x32xbf16>, vector<8x32xf32> -> vector<8x32xf32>
    %64 = vector.extract_strided_slice %13 {offsets = [0, 96], sizes = [8, 32], strides = [1, 1]} : vector<8x128xbf16> to vector<8x32xbf16>
    %65 = vector.extract_strided_slice %14 {offsets = [0, 96], sizes = [8, 32], strides = [1, 1]} : vector<8x128xbf16> to vector<8x32xbf16>
    %cst_21 = arith.constant dense<0.000000e+00> : vector<8x8xf32>
    %66 = tpu.matmul %64, %65, %cst_21 {dimension_numbers = #tpu.dot_dimension_numbers<[1], [1], [0], [0], [0, 0, 1, 0], [], []>} : vector<8x32xbf16>, vector<8x32xbf16>, vector<8x8xf32> -> vector<8x8xf32>
    %cst_22 = arith.constant dense<0xFF800000> : vector<8xf32>
    %67 = vector.multi_reduction <maximumf>, %66, %cst_22 [1] : vector<8x8xf32> to vector<8xf32>
    %68 = vector.shape_cast %67 : vector<8xf32> to vector<8x1xf32>
    %69 = vector.broadcast %68 : vector<8x1xf32> to vector<8x8xf32>
    %70 = arith.subf %66, %69 : vector<8x8xf32>
    %71 = math.exp %70 : vector<8x8xf32>
    %cst_23 = arith.constant dense<0.000000e+00> : vector<8xf32>
    %72 = vector.multi_reduction <add>, %71, %cst_23 [1] : vector<8x8xf32> to vector<8xf32>
    %73 = vector.shape_cast %72 : vector<8xf32> to vector<8x1xf32>
    %74 = tpu.reciprocal %73 {approx = true} : vector<8x1xf32> -> vector<8x1xf32>
    %75 = vector.broadcast %74 : vector<8x1xf32> to vector<8x8xf32>
    %76 = arith.mulf %71, %75 : vector<8x8xf32>
    %77 = arith.truncf %76 : vector<8x8xf32> to vector<8x8xbf16>
    %78 = vector.extract_strided_slice %15 {offsets = [0, 96], sizes = [8, 32], strides = [1, 1]} : vector<8x128xbf16> to vector<8x32xbf16>
    %cst_24 = arith.constant dense<0.000000e+00> : vector<8x32xf32>
    %79 = tpu.matmul %77, %78, %cst_24 {dimension_numbers = #tpu.dot_dimension_numbers<[1], [0], [0], [1], [0, 0, 1, 1], [], []>} : vector<8x8xbf16>, vector<8x32xbf16>, vector<8x32xf32> -> vector<8x32xf32>
    %80 = tpu.concatenate %31, %47, %63, %79 in 1 : vector<8x32xf32>, vector<8x32xf32>, vector<8x32xf32>, vector<8x32xf32> -> vector<8x128xf32>
    %81 = arith.truncf %80 : vector<8x128xf32> to vector<8x128xbf16>
    %c0_25 = arith.constant 0 : index
    %c0_26 = arith.constant 0 : index
    %82 = vector.load %arg5[%c0_25, %c0_26] : memref<128x128xbf16, #tpu.memory_space<vmem>>, vector<128x128xbf16>
    %cst_27 = arith.constant dense<0.000000e+00> : vector<8x128xf32>
    %83 = tpu.matmul %81, %82, %cst_27 {dimension_numbers = #tpu.dot_dimension_numbers<[1], [0], [0], [1], [0, 0, 1, 1], [], []>} : vector<8x128xbf16>, vector<128x128xbf16>, vector<8x128xf32> -> vector<8x128xf32>
    %c0_28 = arith.constant 0 : index
    %c0_29 = arith.constant 0 : index
    %84 = vector.load %arg6[%c0_28, %c0_29] : memref<1x128xf32, #tpu.memory_space<vmem>>, vector<1x128xf32>
    %85 = vector.broadcast %84 : vector<1x128xf32> to vector<8x128xf32>
    %86 = arith.addf %83, %85 : vector<8x128xf32>
    %87 = arith.addf %1, %86 : vector<8x128xf32>
    %c0_30 = arith.constant 0 : index
    %c0_31 = arith.constant 0 : index
    %88 = vector.load %arg17[%c0_30, %c0_31] : memref<1x128xf32, #tpu.memory_space<vmem>>, vector<1x128xf32>
    %c0_32 = arith.constant 0 : index
    %c0_33 = arith.constant 0 : index
    %89 = vector.load %arg18[%c0_32, %c0_33] : memref<1x128xf32, #tpu.memory_space<vmem>>, vector<1x128xf32>
    %cst_34 = arith.constant dense<0.000000e+00> : vector<8xf32>
    %90 = vector.multi_reduction <add>, %87, %cst_34 [1] : vector<8x128xf32> to vector<8xf32>
    %91 = vector.shape_cast %90 : vector<8xf32> to vector<8x1xf32>
    %cst_35 = arith.constant 1.280000e+02 : f32
    %92 = vector.broadcast %cst_35 : f32 to vector<8x1xf32>
    %93 = arith.divf %91, %92 : vector<8x1xf32>
    %94 = vector.broadcast %93 : vector<8x1xf32> to vector<8x128xf32>
    %95 = arith.subf %87, %94 : vector<8x128xf32>
    %96 = arith.mulf %95, %95 : vector<8x128xf32>
    %cst_36 = arith.constant dense<0.000000e+00> : vector<8xf32>
    %97 = vector.multi_reduction <add>, %96, %cst_36 [1] : vector<8x128xf32> to vector<8xf32>
    %98 = vector.shape_cast %97 : vector<8xf32> to vector<8x1xf32>
    %cst_37 = arith.constant 1.280000e+02 : f32
    %99 = vector.broadcast %cst_37 : f32 to vector<8x1xf32>
    %100 = arith.divf %98, %99 : vector<8x1xf32>
    %101 = vector.broadcast %93 : vector<8x1xf32> to vector<8x128xf32>
    %102 = arith.subf %87, %101 : vector<8x128xf32>
    %cst_38 = arith.constant 9.99999974E-6 : f32
    %103 = vector.broadcast %cst_38 : f32 to vector<8x1xf32>
    %104 = arith.addf %100, %103 : vector<8x1xf32>
    %105 = math.rsqrt %104 : vector<8x1xf32>
    %106 = vector.broadcast %105 : vector<8x1xf32> to vector<8x128xf32>
    %107 = arith.mulf %102, %106 : vector<8x128xf32>
    %108 = vector.broadcast %88 : vector<1x128xf32> to vector<8x128xf32>
    %109 = arith.mulf %107, %108 : vector<8x128xf32>
    %110 = vector.broadcast %89 : vector<1x128xf32> to vector<8x128xf32>
    %111 = arith.addf %109, %110 : vector<8x128xf32>
    %112 = arith.truncf %111 : vector<8x128xf32> to vector<8x128xbf16>
    %c0_39 = arith.constant 0 : index
    %c0_40 = arith.constant 0 : index
    %113 = vector.load %arg7[%c0_39, %c0_40] : memref<128x128xbf16, #tpu.memory_space<vmem>>, vector<128x128xbf16>
    %cst_41 = arith.constant dense<0.000000e+00> : vector<8x128xf32>
    %114 = tpu.matmul %112, %113, %cst_41 {dimension_numbers = #tpu.dot_dimension_numbers<[1], [0], [0], [1], [0, 0, 1, 1], [], []>} : vector<8x128xbf16>, vector<128x128xbf16>, vector<8x128xf32> -> vector<8x128xf32>
    %c0_42 = arith.constant 0 : index
    %c0_43 = arith.constant 0 : index
    %115 = vector.load %arg8[%c0_42, %c0_43] : memref<1x128xf32, #tpu.memory_space<vmem>>, vector<1x128xf32>
    %116 = vector.broadcast %115 : vector<1x128xf32> to vector<8x128xf32>
    %117 = arith.addf %114, %116 : vector<8x128xf32>
    %c0_44 = arith.constant 0 : index
    %c0_45 = arith.constant 0 : index
    %118 = vector.load %arg9[%c0_44, %c0_45] : memref<128x256xbf16, #tpu.memory_space<vmem>>, vector<128x256xbf16>
    %cst_46 = arith.constant dense<0.000000e+00> : vector<16x256xf32>
    %119 = tpu.matmul %3, %118, %cst_46 {dimension_numbers = #tpu.dot_dimension_numbers<[1], [0], [0], [1], [0, 0, 1, 1], [], []>} : vector<16x128xbf16>, vector<128x256xbf16>, vector<16x256xf32> -> vector<16x256xf32>
    %c0_47 = arith.constant 0 : index
    %c0_48 = arith.constant 0 : index
    %120 = vector.load %arg10[%c0_47, %c0_48] : memref<1x256xf32, #tpu.memory_space<vmem>>, vector<1x256xf32>
    %121 = vector.broadcast %120 : vector<1x256xf32> to vector<16x256xf32>
    %122 = arith.addf %119, %121 : vector<16x256xf32>
    %123 = vector.extract_strided_slice %122 {offsets = [0, 0], sizes = [16, 128], strides = [1, 1]} : vector<16x256xf32> to vector<16x128xf32>
    %124 = vector.extract_strided_slice %122 {offsets = [0, 128], sizes = [16, 128], strides = [1, 1]} : vector<16x256xf32> to vector<16x128xf32>
    %125 = arith.truncf %117 : vector<8x128xf32> to vector<8x128xbf16>
    %126 = arith.truncf %123 : vector<16x128xf32> to vector<16x128xbf16>
    %127 = arith.truncf %124 : vector<16x128xf32> to vector<16x128xbf16>
    %128 = vector.extract_strided_slice %125 {offsets = [0, 0], sizes = [8, 32], strides = [1, 1]} : vector<8x128xbf16> to vector<8x32xbf16>
    %129 = vector.extract_strided_slice %126 {offsets = [0, 0], sizes = [16, 32], strides = [1, 1]} : vector<16x128xbf16> to vector<16x32xbf16>
    %cst_49 = arith.constant dense<0.000000e+00> : vector<8x16xf32>
    %130 = tpu.matmul %128, %129, %cst_49 {dimension_numbers = #tpu.dot_dimension_numbers<[1], [1], [0], [0], [0, 0, 1, 0], [], []>} : vector<8x32xbf16>, vector<16x32xbf16>, vector<8x16xf32> -> vector<8x16xf32>
    %cst_50 = arith.constant dense<0xFF800000> : vector<8xf32>
    %131 = vector.multi_reduction <maximumf>, %130, %cst_50 [1] : vector<8x16xf32> to vector<8xf32>
    %132 = vector.shape_cast %131 : vector<8xf32> to vector<8x1xf32>
    %133 = vector.broadcast %132 : vector<8x1xf32> to vector<8x16xf32>
    %134 = arith.subf %130, %133 : vector<8x16xf32>
    %135 = math.exp %134 : vector<8x16xf32>
    %cst_51 = arith.constant dense<0.000000e+00> : vector<8xf32>
    %136 = vector.multi_reduction <add>, %135, %cst_51 [1] : vector<8x16xf32> to vector<8xf32>
    %137 = vector.shape_cast %136 : vector<8xf32> to vector<8x1xf32>
    %138 = tpu.reciprocal %137 {approx = true} : vector<8x1xf32> -> vector<8x1xf32>
    %139 = vector.broadcast %138 : vector<8x1xf32> to vector<8x16xf32>
    %140 = arith.mulf %135, %139 : vector<8x16xf32>
    %141 = arith.truncf %140 : vector<8x16xf32> to vector<8x16xbf16>
    %142 = vector.extract_strided_slice %127 {offsets = [0, 0], sizes = [16, 32], strides = [1, 1]} : vector<16x128xbf16> to vector<16x32xbf16>
    %cst_52 = arith.constant dense<0.000000e+00> : vector<8x32xf32>
    %143 = tpu.matmul %141, %142, %cst_52 {dimension_numbers = #tpu.dot_dimension_numbers<[1], [0], [0], [1], [0, 0, 1, 1], [], []>} : vector<8x16xbf16>, vector<16x32xbf16>, vector<8x32xf32> -> vector<8x32xf32>
    %144 = vector.extract_strided_slice %125 {offsets = [0, 32], sizes = [8, 32], strides = [1, 1]} : vector<8x128xbf16> to vector<8x32xbf16>
    %145 = vector.extract_strided_slice %126 {offsets = [0, 32], sizes = [16, 32], strides = [1, 1]} : vector<16x128xbf16> to vector<16x32xbf16>
    %cst_53 = arith.constant dense<0.000000e+00> : vector<8x16xf32>
    %146 = tpu.matmul %144, %145, %cst_53 {dimension_numbers = #tpu.dot_dimension_numbers<[1], [1], [0], [0], [0, 0, 1, 0], [], []>} : vector<8x32xbf16>, vector<16x32xbf16>, vector<8x16xf32> -> vector<8x16xf32>
    %cst_54 = arith.constant dense<0xFF800000> : vector<8xf32>
    %147 = vector.multi_reduction <maximumf>, %146, %cst_54 [1] : vector<8x16xf32> to vector<8xf32>
    %148 = vector.shape_cast %147 : vector<8xf32> to vector<8x1xf32>
    %149 = vector.broadcast %148 : vector<8x1xf32> to vector<8x16xf32>
    %150 = arith.subf %146, %149 : vector<8x16xf32>
    %151 = math.exp %150 : vector<8x16xf32>
    %cst_55 = arith.constant dense<0.000000e+00> : vector<8xf32>
    %152 = vector.multi_reduction <add>, %151, %cst_55 [1] : vector<8x16xf32> to vector<8xf32>
    %153 = vector.shape_cast %152 : vector<8xf32> to vector<8x1xf32>
    %154 = tpu.reciprocal %153 {approx = true} : vector<8x1xf32> -> vector<8x1xf32>
    %155 = vector.broadcast %154 : vector<8x1xf32> to vector<8x16xf32>
    %156 = arith.mulf %151, %155 : vector<8x16xf32>
    %157 = arith.truncf %156 : vector<8x16xf32> to vector<8x16xbf16>
    %158 = vector.extract_strided_slice %127 {offsets = [0, 32], sizes = [16, 32], strides = [1, 1]} : vector<16x128xbf16> to vector<16x32xbf16>
    %cst_56 = arith.constant dense<0.000000e+00> : vector<8x32xf32>
    %159 = tpu.matmul %157, %158, %cst_56 {dimension_numbers = #tpu.dot_dimension_numbers<[1], [0], [0], [1], [0, 0, 1, 1], [], []>} : vector<8x16xbf16>, vector<16x32xbf16>, vector<8x32xf32> -> vector<8x32xf32>
    %160 = vector.extract_strided_slice %125 {offsets = [0, 64], sizes = [8, 32], strides = [1, 1]} : vector<8x128xbf16> to vector<8x32xbf16>
    %161 = vector.extract_strided_slice %126 {offsets = [0, 64], sizes = [16, 32], strides = [1, 1]} : vector<16x128xbf16> to vector<16x32xbf16>
    %cst_57 = arith.constant dense<0.000000e+00> : vector<8x16xf32>
    %162 = tpu.matmul %160, %161, %cst_57 {dimension_numbers = #tpu.dot_dimension_numbers<[1], [1], [0], [0], [0, 0, 1, 0], [], []>} : vector<8x32xbf16>, vector<16x32xbf16>, vector<8x16xf32> -> vector<8x16xf32>
    %cst_58 = arith.constant dense<0xFF800000> : vector<8xf32>
    %163 = vector.multi_reduction <maximumf>, %162, %cst_58 [1] : vector<8x16xf32> to vector<8xf32>
    %164 = vector.shape_cast %163 : vector<8xf32> to vector<8x1xf32>
    %165 = vector.broadcast %164 : vector<8x1xf32> to vector<8x16xf32>
    %166 = arith.subf %162, %165 : vector<8x16xf32>
    %167 = math.exp %166 : vector<8x16xf32>
    %cst_59 = arith.constant dense<0.000000e+00> : vector<8xf32>
    %168 = vector.multi_reduction <add>, %167, %cst_59 [1] : vector<8x16xf32> to vector<8xf32>
    %169 = vector.shape_cast %168 : vector<8xf32> to vector<8x1xf32>
    %170 = tpu.reciprocal %169 {approx = true} : vector<8x1xf32> -> vector<8x1xf32>
    %171 = vector.broadcast %170 : vector<8x1xf32> to vector<8x16xf32>
    %172 = arith.mulf %167, %171 : vector<8x16xf32>
    %173 = arith.truncf %172 : vector<8x16xf32> to vector<8x16xbf16>
    %174 = vector.extract_strided_slice %127 {offsets = [0, 64], sizes = [16, 32], strides = [1, 1]} : vector<16x128xbf16> to vector<16x32xbf16>
    %cst_60 = arith.constant dense<0.000000e+00> : vector<8x32xf32>
    %175 = tpu.matmul %173, %174, %cst_60 {dimension_numbers = #tpu.dot_dimension_numbers<[1], [0], [0], [1], [0, 0, 1, 1], [], []>} : vector<8x16xbf16>, vector<16x32xbf16>, vector<8x32xf32> -> vector<8x32xf32>
    %176 = vector.extract_strided_slice %125 {offsets = [0, 96], sizes = [8, 32], strides = [1, 1]} : vector<8x128xbf16> to vector<8x32xbf16>
    %177 = vector.extract_strided_slice %126 {offsets = [0, 96], sizes = [16, 32], strides = [1, 1]} : vector<16x128xbf16> to vector<16x32xbf16>
    %cst_61 = arith.constant dense<0.000000e+00> : vector<8x16xf32>
    %178 = tpu.matmul %176, %177, %cst_61 {dimension_numbers = #tpu.dot_dimension_numbers<[1], [1], [0], [0], [0, 0, 1, 0], [], []>} : vector<8x32xbf16>, vector<16x32xbf16>, vector<8x16xf32> -> vector<8x16xf32>
    %cst_62 = arith.constant dense<0xFF800000> : vector<8xf32>
    %179 = vector.multi_reduction <maximumf>, %178, %cst_62 [1] : vector<8x16xf32> to vector<8xf32>
    %180 = vector.shape_cast %179 : vector<8xf32> to vector<8x1xf32>
    %181 = vector.broadcast %180 : vector<8x1xf32> to vector<8x16xf32>
    %182 = arith.subf %178, %181 : vector<8x16xf32>
    %183 = math.exp %182 : vector<8x16xf32>
    %cst_63 = arith.constant dense<0.000000e+00> : vector<8xf32>
    %184 = vector.multi_reduction <add>, %183, %cst_63 [1] : vector<8x16xf32> to vector<8xf32>
    %185 = vector.shape_cast %184 : vector<8xf32> to vector<8x1xf32>
    %186 = tpu.reciprocal %185 {approx = true} : vector<8x1xf32> -> vector<8x1xf32>
    %187 = vector.broadcast %186 : vector<8x1xf32> to vector<8x16xf32>
    %188 = arith.mulf %183, %187 : vector<8x16xf32>
    %189 = arith.truncf %188 : vector<8x16xf32> to vector<8x16xbf16>
    %190 = vector.extract_strided_slice %127 {offsets = [0, 96], sizes = [16, 32], strides = [1, 1]} : vector<16x128xbf16> to vector<16x32xbf16>
    %cst_64 = arith.constant dense<0.000000e+00> : vector<8x32xf32>
    %191 = tpu.matmul %189, %190, %cst_64 {dimension_numbers = #tpu.dot_dimension_numbers<[1], [0], [0], [1], [0, 0, 1, 1], [], []>} : vector<8x16xbf16>, vector<16x32xbf16>, vector<8x32xf32> -> vector<8x32xf32>
    %192 = tpu.concatenate %143, %159, %175, %191 in 1 : vector<8x32xf32>, vector<8x32xf32>, vector<8x32xf32>, vector<8x32xf32> -> vector<8x128xf32>
    %193 = arith.truncf %192 : vector<8x128xf32> to vector<8x128xbf16>
    %c0_65 = arith.constant 0 : index
    %c0_66 = arith.constant 0 : index
    %194 = vector.load %arg11[%c0_65, %c0_66] : memref<128x128xbf16, #tpu.memory_space<vmem>>, vector<128x128xbf16>
    %cst_67 = arith.constant dense<0.000000e+00> : vector<8x128xf32>
    %195 = tpu.matmul %193, %194, %cst_67 {dimension_numbers = #tpu.dot_dimension_numbers<[1], [0], [0], [1], [0, 0, 1, 1], [], []>} : vector<8x128xbf16>, vector<128x128xbf16>, vector<8x128xf32> -> vector<8x128xf32>
    %c0_68 = arith.constant 0 : index
    %c0_69 = arith.constant 0 : index
    %196 = vector.load %arg12[%c0_68, %c0_69] : memref<1x128xf32, #tpu.memory_space<vmem>>, vector<1x128xf32>
    %197 = vector.broadcast %196 : vector<1x128xf32> to vector<8x128xf32>
    %198 = arith.addf %195, %197 : vector<8x128xf32>
    %199 = arith.addf %111, %198 : vector<8x128xf32>
    %c0_70 = arith.constant 0 : index
    %c0_71 = arith.constant 0 : index
    %200 = vector.load %arg19[%c0_70, %c0_71] : memref<1x128xf32, #tpu.memory_space<vmem>>, vector<1x128xf32>
    %c0_72 = arith.constant 0 : index
    %c0_73 = arith.constant 0 : index
    %201 = vector.load %arg20[%c0_72, %c0_73] : memref<1x128xf32, #tpu.memory_space<vmem>>, vector<1x128xf32>
    %cst_74 = arith.constant dense<0.000000e+00> : vector<8xf32>
    %202 = vector.multi_reduction <add>, %199, %cst_74 [1] : vector<8x128xf32> to vector<8xf32>
    %203 = vector.shape_cast %202 : vector<8xf32> to vector<8x1xf32>
    %cst_75 = arith.constant 1.280000e+02 : f32
    %204 = vector.broadcast %cst_75 : f32 to vector<8x1xf32>
    %205 = arith.divf %203, %204 : vector<8x1xf32>
    %206 = vector.broadcast %205 : vector<8x1xf32> to vector<8x128xf32>
    %207 = arith.subf %199, %206 : vector<8x128xf32>
    %208 = arith.mulf %207, %207 : vector<8x128xf32>
    %cst_76 = arith.constant dense<0.000000e+00> : vector<8xf32>
    %209 = vector.multi_reduction <add>, %208, %cst_76 [1] : vector<8x128xf32> to vector<8xf32>
    %210 = vector.shape_cast %209 : vector<8xf32> to vector<8x1xf32>
    %cst_77 = arith.constant 1.280000e+02 : f32
    %211 = vector.broadcast %cst_77 : f32 to vector<8x1xf32>
    %212 = arith.divf %210, %211 : vector<8x1xf32>
    %213 = vector.broadcast %205 : vector<8x1xf32> to vector<8x128xf32>
    %214 = arith.subf %199, %213 : vector<8x128xf32>
    %cst_78 = arith.constant 9.99999974E-6 : f32
    %215 = vector.broadcast %cst_78 : f32 to vector<8x1xf32>
    %216 = arith.addf %212, %215 : vector<8x1xf32>
    %217 = math.rsqrt %216 : vector<8x1xf32>
    %218 = vector.broadcast %217 : vector<8x1xf32> to vector<8x128xf32>
    %219 = arith.mulf %214, %218 : vector<8x128xf32>
    %220 = vector.broadcast %200 : vector<1x128xf32> to vector<8x128xf32>
    %221 = arith.mulf %219, %220 : vector<8x128xf32>
    %222 = vector.broadcast %201 : vector<1x128xf32> to vector<8x128xf32>
    %223 = arith.addf %221, %222 : vector<8x128xf32>
    %224 = arith.truncf %223 : vector<8x128xf32> to vector<8x128xbf16>
    %c0_79 = arith.constant 0 : index
    %c0_80 = arith.constant 0 : index
    %225 = vector.load %arg13[%c0_79, %c0_80] : memref<128x256xbf16, #tpu.memory_space<vmem>>, vector<128x256xbf16>
    %cst_81 = arith.constant dense<0.000000e+00> : vector<8x256xf32>
    %226 = tpu.matmul %224, %225, %cst_81 {dimension_numbers = #tpu.dot_dimension_numbers<[1], [0], [0], [1], [0, 0, 1, 1], [], []>} : vector<8x128xbf16>, vector<128x256xbf16>, vector<8x256xf32> -> vector<8x256xf32>
    %c0_82 = arith.constant 0 : index
    %c0_83 = arith.constant 0 : index
    %227 = vector.load %arg14[%c0_82, %c0_83] : memref<1x256xf32, #tpu.memory_space<vmem>>, vector<1x256xf32>
    %228 = vector.broadcast %227 : vector<1x256xf32> to vector<8x256xf32>
    %229 = arith.addf %226, %228 : vector<8x256xf32>
    %cst_84 = arith.constant 0.000000e+00 : f32
    %230 = vector.broadcast %cst_84 : f32 to vector<8x256xf32>
    %231 = arith.maximumf %229, %230 : vector<8x256xf32>
    %232 = arith.truncf %231 : vector<8x256xf32> to vector<8x256xbf16>
    %c0_85 = arith.constant 0 : index
    %c0_86 = arith.constant 0 : index
    %233 = vector.load %arg15[%c0_85, %c0_86] : memref<256x128xbf16, #tpu.memory_space<vmem>>, vector<256x128xbf16>
    %cst_87 = arith.constant dense<0.000000e+00> : vector<8x128xf32>
    %234 = tpu.matmul %232, %233, %cst_87 {dimension_numbers = #tpu.dot_dimension_numbers<[1], [0], [0], [1], [0, 0, 1, 1], [], []>} : vector<8x256xbf16>, vector<256x128xbf16>, vector<8x128xf32> -> vector<8x128xf32>
    %c0_88 = arith.constant 0 : index
    %c0_89 = arith.constant 0 : index
    %235 = vector.load %arg16[%c0_88, %c0_89] : memref<1x128xf32, #tpu.memory_space<vmem>>, vector<1x128xf32>
    %236 = vector.broadcast %235 : vector<1x128xf32> to vector<8x128xf32>
    %237 = arith.addf %234, %236 : vector<8x128xf32>
    %238 = arith.addf %223, %237 : vector<8x128xf32>
    %c0_90 = arith.constant 0 : index
    %c0_91 = arith.constant 0 : index
    %239 = vector.load %arg21[%c0_90, %c0_91] : memref<1x128xf32, #tpu.memory_space<vmem>>, vector<1x128xf32>
    %c0_92 = arith.constant 0 : index
    %c0_93 = arith.constant 0 : index
    %240 = vector.load %arg22[%c0_92, %c0_93] : memref<1x128xf32, #tpu.memory_space<vmem>>, vector<1x128xf32>
    %cst_94 = arith.constant dense<0.000000e+00> : vector<8xf32>
    %241 = vector.multi_reduction <add>, %238, %cst_94 [1] : vector<8x128xf32> to vector<8xf32>
    %242 = vector.shape_cast %241 : vector<8xf32> to vector<8x1xf32>
    %cst_95 = arith.constant 1.280000e+02 : f32
    %243 = vector.broadcast %cst_95 : f32 to vector<8x1xf32>
    %244 = arith.divf %242, %243 : vector<8x1xf32>
    %245 = vector.broadcast %244 : vector<8x1xf32> to vector<8x128xf32>
    %246 = arith.subf %238, %245 : vector<8x128xf32>
    %247 = arith.mulf %246, %246 : vector<8x128xf32>
    %cst_96 = arith.constant dense<0.000000e+00> : vector<8xf32>
    %248 = vector.multi_reduction <add>, %247, %cst_96 [1] : vector<8x128xf32> to vector<8xf32>
    %249 = vector.shape_cast %248 : vector<8xf32> to vector<8x1xf32>
    %cst_97 = arith.constant 1.280000e+02 : f32
    %250 = vector.broadcast %cst_97 : f32 to vector<8x1xf32>
    %251 = arith.divf %249, %250 : vector<8x1xf32>
    %252 = vector.broadcast %244 : vector<8x1xf32> to vector<8x128xf32>
    %253 = arith.subf %238, %252 : vector<8x128xf32>
    %cst_98 = arith.constant 9.99999974E-6 : f32
    %254 = vector.broadcast %cst_98 : f32 to vector<8x1xf32>
    %255 = arith.addf %251, %254 : vector<8x1xf32>
    %256 = math.rsqrt %255 : vector<8x1xf32>
    %257 = vector.broadcast %256 : vector<8x1xf32> to vector<8x128xf32>
    %258 = arith.mulf %253, %257 : vector<8x128xf32>
    %259 = vector.broadcast %239 : vector<1x128xf32> to vector<8x128xf32>
    %260 = arith.mulf %258, %259 : vector<8x128xf32>
    %261 = vector.broadcast %240 : vector<1x128xf32> to vector<8x128xf32>
    %262 = arith.addf %260, %261 : vector<8x128xf32>
    %c0_99 = arith.constant 0 : index
    %c0_100 = arith.constant 0 : index
    %c0_101 = arith.constant 0 : index
    %263 = vector.load %arg23[%c0_99, %c0_100, %c0_101] : memref<1x8x128xf32, #tpu.memory_space<vmem>>, vector<1x8x128xf32>
    %264 = vector.shape_cast %263 : vector<1x8x128xf32> to vector<8x128xf32>
    %265 = vector.shape_cast %262 : vector<8x128xf32> to vector<1x8x128xf32>
    tpu.vector_store %arg23[%c0_99, %c0_100, %c0_101], %265 {strides = array<i32>} : memref<1x8x128xf32, #tpu.memory_space<vmem>>, vector<1x8x128xf32>,
    return
  }
  func.func @transform_0(%arg0: i32) -> (i32, i32, i32) {
    %c0_i32 = arith.constant 0 : i32
    %c0_i32_0 = arith.constant 0 : i32
    %c0_i32_1 = arith.constant 0 : i32
    return %arg0, %c0_i32, %c0_i32_0 : i32, i32, i32
  }
  func.func @transform_1(%arg0: i32) -> (i32, i32, i32) {
    %c0_i32 = arith.constant 0 : i32
    %c0_i32_0 = arith.constant 0 : i32
    %c0_i32_1 = arith.constant 0 : i32
    return %arg0, %c0_i32, %c0_i32_0 : i32, i32, i32
  }
  func.func @transform_2(%arg0: i32) -> (i32, i32) {
    %c0_i32 = arith.constant 0 : i32
    %c0_i32_0 = arith.constant 0 : i32
    %c0_i32_1 = arith.constant 0 : i32
    return %c0_i32, %c0_i32_0 : i32, i32
  }
  func.func @transform_3(%arg0: i32) -> (i32, i32) {
    %c0_i32 = arith.constant 0 : i32
    %c0_i32_0 = arith.constant 0 : i32
    %c0_i32_1 = arith.constant 0 : i32
    return %c0_i32, %c0_i32_0 : i32, i32
  }
  func.func @transform_4(%arg0: i32) -> (i32, i32) {
    %c0_i32 = arith.constant 0 : i32
    %c0_i32_0 = arith.constant 0 : i32
    %c0_i32_1 = arith.constant 0 : i32
    return %c0_i32, %c0_i32_0 : i32, i32
  }
  func.func @transform_5(%arg0: i32) -> (i32, i32) {
    %c0_i32 = arith.constant 0 : i32
    %c0_i32_0 = arith.constant 0 : i32
    %c0_i32_1 = arith.constant 0 : i32
    return %c0_i32, %c0_i32_0 : i32, i32
  }
  func.func @transform_6(%arg0: i32) -> (i32, i32) {
    %c0_i32 = arith.constant 0 : i32
    %c0_i32_0 = arith.constant 0 : i32
    %c0_i32_1 = arith.constant 0 : i32
    return %c0_i32, %c0_i32_0 : i32, i32
  }
  func.func @transform_7(%arg0: i32) -> (i32, i32) {
    %c0_i32 = arith.constant 0 : i32
    %c0_i32_0 = arith.constant 0 : i32
    %c0_i32_1 = arith.constant 0 : i32
    return %c0_i32, %c0_i32_0 : i32, i32
  }
  func.func @transform_8(%arg0: i32) -> (i32, i32) {
    %c0_i32 = arith.constant 0 : i32
    %c0_i32_0 = arith.constant 0 : i32
    %c0_i32_1 = arith.constant 0 : i32
    return %c0_i32, %c0_i32_0 : i32, i32
  }
  func.func @transform_9(%arg0: i32) -> (i32, i32) {
    %c0_i32 = arith.constant 0 : i32
    %c0_i32_0 = arith.constant 0 : i32
    %c0_i32_1 = arith.constant 0 : i32
    return %c0_i32, %c0_i32_0 : i32, i32
  }
  func.func @transform_10(%arg0: i32) -> (i32, i32) {
    %c0_i32 = arith.constant 0 : i32
    %c0_i32_0 = arith.constant 0 : i32
    %c0_i32_1 = arith.constant 0 : i32
    return %c0_i32, %c0_i32_0 : i32, i32
  }
  func.func @transform_11(%arg0: i32) -> (i32, i32) {
    %c0_i32 = arith.constant 0 : i32
    %c0_i32_0 = arith.constant 0 : i32
    %c0_i32_1 = arith.constant 0 : i32
    return %c0_i32, %c0_i32_0 : i32, i32
  }
  func.func @transform_12(%arg0: i32) -> (i32, i32) {
    %c0_i32 = arith.constant 0 : i32
    %c0_i32_0 = arith.constant 0 : i32
    %c0_i32_1 = arith.constant 0 : i32
    return %c0_i32, %c0_i32_0 : i32, i32
  }
  func.func @transform_13(%arg0: i32) -> (i32, i32) {
    %c0_i32 = arith.constant 0 : i32
    %c0_i32_0 = arith.constant 0 : i32
    %c0_i32_1 = arith.constant 0 : i32
    return %c0_i32, %c0_i32_0 : i32, i32
  }
  func.func @transform_14(%arg0: i32) -> (i32, i32) {
    %c0_i32 = arith.constant 0 : i32
    %c0_i32_0 = arith.constant 0 : i32
    %c0_i32_1 = arith.constant 0 : i32
    return %c0_i32, %c0_i32_0 : i32, i32
  }
  func.func @transform_15(%arg0: i32) -> (i32, i32) {
    %c0_i32 = arith.constant 0 : i32
    %c0_i32_0 = arith.constant 0 : i32
    %c0_i32_1 = arith.constant 0 : i32
    return %c0_i32, %c0_i32_0 : i32, i32
  }
  func.func @transform_16(%arg0: i32) -> (i32, i32) {
    %c0_i32 = arith.constant 0 : i32
    %c0_i32_0 = arith.constant 0 : i32
    %c0_i32_1 = arith.constant 0 : i32
    return %c0_i32, %c0_i32_0 : i32, i32
  }
  func.func @transform_17(%arg0: i32) -> (i32, i32) {
    %c0_i32 = arith.constant 0 : i32
    %c0_i32_0 = arith.constant 0 : i32
    %c0_i32_1 = arith.constant 0 : i32
    return %c0_i32, %c0_i32_0 : i32, i32
  }
  func.func @transform_18(%arg0: i32) -> (i32, i32) {
    %c0_i32 = arith.constant 0 : i32
    %c0_i32_0 = arith.constant 0 : i32
    %c0_i32_1 = arith.constant 0 : i32
    return %c0_i32, %c0_i32_0 : i32, i32
  }
  func.func @transform_19(%arg0: i32) -> (i32, i32) {
    %c0_i32 = arith.constant 0 : i32
    %c0_i32_0 = arith.constant 0 : i32
    %c0_i32_1 = arith.constant 0 : i32
    return %c0_i32, %c0_i32_0 : i32, i32
  }
  func.func @transform_20(%arg0: i32) -> (i32, i32) {
    %c0_i32 = arith.constant 0 : i32
    %c0_i32_0 = arith.constant 0 : i32
    %c0_i32_1 = arith.constant 0 : i32
    return %c0_i32, %c0_i32_0 : i32, i32
  }
  func.func @transform_21(%arg0: i32) -> (i32, i32) {
    %c0_i32 = arith.constant 0 : i32
    %c0_i32_0 = arith.constant 0 : i32
    %c0_i32_1 = arith.constant 0 : i32
    return %c0_i32, %c0_i32_0 : i32, i32
  }
  func.func @transform_22(%arg0: i32) -> (i32, i32, i32) {
    %c0_i32 = arith.constant 0 : i32
    %c0_i32_0 = arith.constant 0 : i32
    %c0_i32_1 = arith.constant 0 : i32
    return %arg0, %c0_i32, %c0_i32_0 : i32, i32, i32
  }
}

</mosaic_0001>

<bundles_post_ra>
// kernel: _decoder_layer_call.1
= control target key start
LH: loop header
LB: loop body
LE: loop exit
PB: predicated region body
PF: predicated region fallthrough
CT: control target
= control target key end

     0   :  { %s3893_s0 = inlined_call_operand.vmem [shape: f32[2,8,128], index: 0, kind: input, shape index: {}]   ;;  %s3894_s1 = inlined_call_operand.vmem [shape: bf16[2,16,128], index: 1, kind: input, shape index: {}]   ;;  %s3895_s2 = inlined_call_operand.hbm [shape: bf16[128,384], index: 2, kind: input, shape index: {}]   ;;  %s3896_s3 = inlined_call_operand.vmem [shape: f32[1,384], index: 3, kind: input, shape index: {}]   ;;  %s3897_s4 = inlined_call_operand.hbm [shape: bf16[128,128], index: 4, kind: input, shape index: {}]   ;;  %s3898_s5 = inlined_call_operand.vmem [shape: f32[1,128], index: 5, kind: input, shape index: {}]   ;;  %s3899_s6 = inlined_call_operand.hbm [shape: bf16[128,128], index: 6, kind: input, shape index: {}]   ;;  %s3900_s7 = inlined_call_operand.vmem [shape: f32[1,128], index: 7, kind: input, shape index: {}]   ;;  %s3901_s8 = inlined_call_operand.hbm [shape: bf16[128,256], index: 8, kind: input, shape index: {}]   ;;  %s3902_s9 = inlined_call_operand.vmem [shape: f32[1,256], index: 9, kind: input, shape index: {}]   ;;  %s3903_s10 = inlined_call_operand.hbm [shape: bf16[128,128], index: 10, kind: input, shape index: {}]   ;;  %s3904_s11 = inlined_call_operand.vmem [shape: f32[1,128], index: 11, kind: input, shape index: {}]   ;;  %s3905_s12 = inlined_call_operand.hbm [shape: bf16[128,256], index: 12, kind: input, shape index: {}]   ;;  %s3906_s13 = inlined_call_operand.vmem [shape: f32[1,256], index: 13, kind: input, shape index: {}]   ;;  %s3907_s14 = inlined_call_operand.hbm [shape: bf16[256,128], index: 14, kind: input, shape index: {}]   ;;  %s3908_s15 = inlined_call_operand.vmem [shape: f32[1,128], index: 15, kind: input, shape index: {}]   ;;  %s3909_s16 = inlined_call_operand.vmem [shape: f32[1,128], index: 16, kind: input, shape index: {}]   ;;  %s3910_s17 = inlined_call_operand.vmem [shape: f32[1,128], index: 17, kind: input, shape index: {}]   ;;  %s3911_s18 = inlined_call_operand.vmem [shape: f32[1,128], index: 18, kind: input, shape index: {}]   ;;  %s3912_s19 = inlined_call_operand.vmem [shape: f32[1,128], index: 19, kind: input, shape index: {}]   ;;  %s3913_s20 = inlined_call_operand.vmem [shape: f32[1,128], index: 20, kind: input, shape index: {}]   ;;  %s3914_s21 = inlined_call_operand.vmem [shape: f32[1,128], index: 21, kind: input, shape index: {}]   ;;  %s3915_s22 = inlined_call_operand.hbm [shape: f32[2,8,128], index: 22, kind: output, shape index: {}]  }
   0x1   :  { %3928 = sst [smem:[#allocation28_spill]] %s3893_s0 }
   0x2   :  { %3929 = sst [smem:[#allocation29_spill]] %s3894_s1 }
   0x3   :  { %3930 = sst [smem:[#allocation30_spill]] %s3895_s2 }
   0x4   :  { %3931 = sst [smem:[#allocation31_spill]] %s3896_s3 }
   0x5   :  { %3932 = sst [smem:[#allocation32_spill]] %s3897_s4 }
   0x6   :  { %3933 = sst [smem:[#allocation33_spill]] %s3898_s5 }
   0x7   :  { %3934 = sst [smem:[#allocation34_spill]] %s3899_s6 }
   0x8   :  { %3935 = sst [smem:[#allocation35_spill]] %s3901_s8 }
   0x9   :  { %3936 = sst [smem:[#allocation36_spill]] %s3908_s15 }
   0xa   :  { %3937 = sst [smem:[#allocation37_spill]] %s3913_s20 }
   0xb   :  { %3938 = sst [smem:[#allocation38_spill]] %s3914_s21 }
   0xc   :  { %3939 = sst [smem:[#allocation39_spill]] %s3915_s22 }
   0xd   :  { %27 = vsyncpa [#allocation3], 0 }
   0xe   :  { %28 = vsyncpa [#allocation6], 0 }
   0xf   :  { %29 = vsyncpa [#allocation9], 0 }
  0x10   :  { %30 = vsyncpa [#allocation12], 0 }
  0x11   :  { %31 = vsyncpa [#allocation4], 0 }
  0x12   :  { %33 = vsyncpa [#allocation4 + $0x1], 0  ;;  %s3571_s3 = smov 0   ;;  %s3573_s28 = smov 0  }
  0x13   :  { %s3575_s29 = smov 0   ;;  %s3577_s30 = smov 0  }
  0x14 LB: > { %3940 = sst [smem:[#allocation20_spill]] %s3425_s3  ;;  %s3592_s4 = sadd.s32 4294967295, %s3437_s30   ;;  %s3437_s30 = sphi %s3577_s30, %s3970_s30   ;;  %s3433_s29 = sphi %s3575_s29, %s3973_s29   ;;  %s3429_s28 = sphi %s3573_s28, %s3972_s28   ;;  %s3425_s3 = sphi %s3571_s3, %s3971_s3  }
  0x15   : > { %3941 = sst [smem:[#allocation21_spill]] %s3429_s28  ;;  %s2451_s0 = sadd.s32 4294967294, %s3437_s30  }
  0x16   : > { %3942 = sst [smem:[#allocation22_spill]] %s3433_s29  ;;  %s3596_s23 = sadd.s32 1, %s3437_s30  }
  0x17   : > { %3943 = sst [smem:[#allocation23_spill]] %s3437_s30  ;;  %s518_s1 = sadd.s32 1, %s3433_s29 }
  0x18   : > { %3944 = sst [smem:[#allocation24_spill]] %s3596_s23  ;;  %s515_s5 = ssub.s32 %s3437_s30, %s3596_s23 }
  0x19   : > { %p528_p0 = scmp.ne.s32.totalorder %s3433_s29, %s3429_s28  ;;  %p516_p1 = scmp.eq.s32.totalorder %s515_s5, 0 }
  0x1a   : > { %p529_p2 = scmp.eq.s32.totalorder %s3592_s4, 1  ;;  %p534_p3 = scmp.ne.s32.totalorder %s3429_s28, %s3425_s3 }
  0x1b   : > { %p535_p4 = scmp.eq.s32.totalorder %s2451_s0, 1  ;;  %p2452_p7 = scmp.ge.s32.totalorder %s3437_s30, 1 }
  0x1c   : > { %s3607_s24 = scalar_select %p516_p1, %s3433_s29, %s518_s1  }
  0x1d   : > { %p3609_p5 = por %p529_p2, %p528_p0  ;;  %p3613_p6 = por %p535_p4, %p534_p3 }
  0x1e   : > { %3945 = sst [smem:[#allocation25_spill]] %s3607_s24  ;;  %p542_p8 = scmp.lt.s32.totalorder %s3437_s30, 3 }
  0x1f   : > { %s3946_s6 = scalar_select %p3609_p5, 1, 0 }
  0x20   : > { %s3948_s25 = scalar_select %p3613_p6, 1, 0 }
  0x21   : > { %3947 = sst [smem:[#allocation26_spill]] %s3946_s6  ;;  %p3035_p9 = scmp.eq.s32.totalorder %s3592_s4, 0 }
  0x22   : > { %3949 = sst [smem:[#allocation27_spill]] %s3948_s25  ;;  %p3620_p10 = pnand %p2452_p7, %p542_p8 }
  0x23   : > { %s3951_s0 = sld [smem:[#allocation32_spill]]  ;;  %s3439_s5 = smov [#allocation5]  }
  0x24   : > { %p3009_p11 = pneg %p3620_p10  ;;  %s572_s24 = sshll.u32 %s3439_s5, 4  ;;  %s573_s24 = int_to_ptr.vmem [resolvable:$true] %s572_s24 }
  0x25   : > { %s3953_s8 = sld [smem:[#allocation35_spill]]  ;;  %s3926_s2 = smov 64  }
  0x26   : > { %p3631_p12 = pnand %p3035_p9, %p3009_p11  ;;  %s3441_s27 = smov 4  }
  0x27   : > { %s3443_s30 = smov 128   ;;  %s3444_s21 = smov 8  }
  0x28   : > { %s3445_s6 = smov [#allocation11]   ;;  %s3954_s15 = sld [smem:[#allocation30_spill]] }
  0x29   : > { %s570_s1 = sshll.u32 %s3951_s0, 4  ;;  %s3442_s0 = smov [#allocation8]   ;;  %s571_s1 = int_to_ptr.hbm [resolvable:$true] %s570_s1 }
  0x2a   : > { %3015 = dma.hbm_to_vmem [thread:$0]  (!%p3631_p12), %s571_s1, 1024, %s573_s24, [#allocation6], %s3926_s2, %s3926_s2, %s3441_s27  }
  0x2b   : > { %s604_s3 = sshll.u32 %s3953_s8, 4  ;;  %s606_s5 = sshll.u32 %s3442_s0, 4  ;;  %s605_s3 = int_to_ptr.hbm [resolvable:$true] %s604_s3  ;;  %s607_s5 = int_to_ptr.vmem [resolvable:$true] %s606_s5 }
  0x2c   : > { %3021 = dma.hbm_to_vmem [thread:$0]  (!%p3631_p12), %s605_s3, 2048, %s607_s5, [#allocation9], %s3443_s30, %s3443_s30, %s3444_s21  }
  0x2d   : > { %s638_s8 = sshll.u32 %s3905_s12, 4  ;;  %s640_s22 = sshll.u32 %s3445_s6, 4  ;;  %s639_s8 = int_to_ptr.hbm [resolvable:$true] %s638_s8  ;;  %s641_s22 = int_to_ptr.vmem [resolvable:$true] %s640_s22 }
  0x2e   : > { %s553_s24 = sshll.u32 %s3954_s15, 4  ;;  %s3446_s1 = smov [#allocation2]   ;;  %s554_s24 = int_to_ptr.hbm [resolvable:$true] %s553_s24 }
  0x2f   : > { %3027 = dma.hbm_to_vmem [thread:$0]  (!%p3631_p12), %s639_s8, 2048, %s641_s22, [#allocation12], %s3443_s30, %s3443_s30, %s3444_s21  }
  0x30   : > { %s555_s0 = sshll.u32 %s3446_s1, 4  ;;  %s3447_s3 = smov 192   ;;  %s556_s0 = int_to_ptr.vmem [resolvable:$true] %s555_s0 }
  0x31   : > { %s3448_s5 = smov 12   ;;  %s3955_s6 = sld [smem:[#allocation34_spill]] }
  0x32   : > { %3012 = dma.hbm_to_vmem [thread:$0]  (!%p3631_p12), %s554_s24, 3072, %s556_s0, [#allocation3], %s3447_s3, %s3447_s3, %s3448_s5  }
  0x33   : > { %s3449_s20 = smov [#allocation7]   ;;  %s621_s21 = sshll.u32 %s3903_s10, 4  ;;  %s622_s21 = int_to_ptr.hbm [resolvable:$true] %s621_s21 }
  0x34   : > { %s589_s28 = sshll.u32 %s3449_s20, 4  ;;  %s3956_s22 = smov 64   ;;  %s590_s28 = int_to_ptr.vmem [resolvable:$true] %s589_s28 }
  0x35   : > { %s3450_s30 = smov [#allocation10]   ;;  %s655_s3 = sshll.u32 %s3907_s14, 4  ;;  %s656_s3 = int_to_ptr.hbm [resolvable:$true] %s655_s3 }
  0x36   : > { %s623_s24 = sshll.u32 %s3450_s30, 4  ;;  %s3451_s5 = smov [#allocation13]   ;;  %s624_s24 = int_to_ptr.vmem [resolvable:$true] %s623_s24 }
  0x37   : > { %s587_s2 = sshll.u32 %s3955_s6, 4  ;;  %s657_s23 = sshll.u32 %s3451_s5, 4  ;;  %s588_s2 = int_to_ptr.hbm [resolvable:$true] %s587_s2  ;;  %s658_s23 = int_to_ptr.vmem [resolvable:$true] %s657_s23 }
  0x38   : > { %3018 = dma.hbm_to_vmem [thread:$0]  (!%p3631_p12), %s588_s2, 1024, %s590_s28, [#allocation6], %s3956_s22, %s3956_s22, %s3441_s27  }
  0x39   : > { %3024 = dma.hbm_to_vmem [thread:$0]  (!%p3631_p12), %s622_s21, 1024, %s624_s24, [#allocation9], %s3956_s22, %s3956_s22, %s3441_s27  }
  0x3a   : > { %3030 = dma.hbm_to_vmem [thread:$0]  (!%p3631_p12), %s656_s3, 2048, %s658_s23, [#allocation12], %s3956_s22, %s3956_s22, %s3441_s27  }
  0x3b   : > { %709 = sbr.rel (%p3620_p10) target bundleno = 3577 (0xdf9), region = 108 }
  0x40   : > { %3404 = dma.done.wait (%p3035_p9), [#allocation3], 3072  }
  0x41   : > { %3406 = vsyncadd (%p3035_p9), [#allocation3], 4294964224 }
  0x42   : > { %3408 = dma.done.wait (%p3035_p9), [#allocation6], 2048  }
  0x43   : > { %3410 = vsyncadd (%p3035_p9), [#allocation6], 4294965248 }
  0x44   : > { %3412 = dma.done.wait (%p3035_p9), [#allocation9], 3072  }
  0x45   : > { %3414 = vsyncadd (%p3035_p9), [#allocation9], 4294964224 }
  0x46   : > { %3416 = dma.done.wait (%p3035_p9), [#allocation12], 4096  }
  0x47   : > { %3418 = vsyncadd (%p3035_p9), [#allocation12], 4294963200  ;;  %v2559_v0 = vld [vmem:[#allocation2 + $0xa8] sm:$0xf]  ;;  %v2905_v1 = vld [vmem:[#allocation2 + $0xb0] sm:$0xf0] }
  0x48   : > { %v2904_v2 = vld [vmem:[#allocation2 + $0xac] sm:$0xf]  ;;  %v2560_v3 = vor.u32 %v2905_v1, %v2559_v0  ;;  %v2561_v4 = vld [vmem:[#allocation2 + $0xb4] sm:$0xf0]  ;;  %v2547_v5 = vld [vmem:[#allocation2 + $0x90] sm:$0xf] }
  0x49   : > { %v2902_v6 = vld [vmem:[#allocation2 + $0x98] sm:$0xf0]  ;;  %v2564_v7 = vor.u32 %v2904_v2, %v2561_v4  ;;  %v2901_v8 = vld [vmem:[#allocation2 + $0x94] sm:$0xf]  ;;  %v2549_v9 = vld [vmem:[#allocation2 + $0x9c] sm:$0xf0] }
  0x4a   : > { %988 = vmatpush.bf16.msra.mxu0 %v2560_v3  ;;  %v2548_v10 = vor.u32 %v2902_v6, %v2547_v5  ;;  %v2552_v11 = vor.u32 %v2901_v8, %v2549_v9  ;;  %v2535_v12 = vld [vmem:[#allocation2 + $0x78] sm:$0xf]  ;;  %v2899_v13 = vld [vmem:[#allocation2 + $0x80] sm:$0xf0]  ;;  %v2898_v14 = vld [vmem:[#allocation2 + $0x7c] sm:$0xf] }
  0x4b   : > { %1001 = vmatpush.bf16.msra.mxu1 %v2564_v7  ;;  %v2537_v15 = vld [vmem:[#allocation2 + $0x84] sm:$0xf0]  ;;  %v2536_v16 = vor.u32 %v2899_v13, %v2535_v12  ;;  %v2523_v18 = vld [vmem:[#allocation2 + $0x60] sm:$0xf]  ;;  %v2896_v19 = vld [vmem:[#allocation2 + $0x68] sm:$0xf0] }
  0x4c   : > { %v2540_v17 = vor.u32 %v2898_v14, %v2537_v15  ;;  %v2895_v20 = vld [vmem:[#allocation2 + $0x64] sm:$0xf]  ;;  %v2525_v21 = vld [vmem:[#allocation2 + $0x6c] sm:$0xf0]  ;;  %p806_p13 = scmp.lt.s32.totalorder %s3592_s4, 1  ;;  %v2524_v22 = vor.u32 %v2896_v19, %v2523_v18  ;;  %s3957_s25 = sld [smem:[#allocation28_spill]] }
  0x4d   : > { %v2567_v23 = vld [vmem:[#allocation2 + $0xb0] sm:$0xf]  ;;  %v2906_v24 = vld [vmem:[#allocation2 + $0xb8] sm:$0xf0]  ;;  %v2555_v25 = vld [vmem:[#allocation2 + $0x98] sm:$0xf]  ;;  %v2528_v26 = vor.u32 %v2895_v20, %v2525_v21 }
  0x4e   : > { %989 = vmatpush.bf16.msra.mxu0 %v2548_v10  ;;  %v2511_v27 = vld [vmem:[#allocation2 + $0x48] sm:$0xf]  ;;  %v2893_v28 = vld [vmem:[#allocation2 + $0x50] sm:$0xf0]  ;;  %v2568_v29 = vor.u32 %v2906_v24, %v2567_v23  ;;  %v2903_v30 = vld [vmem:[#allocation2 + $0xa0] sm:$0xf0] }
  0x4f   : > { %1002 = vmatpush.bf16.msra.mxu1 %v2552_v11  ;;  %v2892_v31 = vld [vmem:[#allocation2 + $0x4c] sm:$0xf]  ;;  %v2513_v32 = vld [vmem:[#allocation2 + $0x54] sm:$0xf0]  ;;  %v2499_v33 = vld [vmem:[#allocation2 + $0x30] sm:$0xf]  ;;  %v2556_v34 = vor.u32 %v2903_v30, %v2555_v25  ;;  %v2512_v35 = vor.u32 %v2893_v28, %v2511_v27 }
  0x50   : > { %s3701_s29 = scalar_select %p806_p13, %s3592_s4, 1  ;;  %1014 = vmatpush.bf16.msra.mxu2 %v2568_v29  ;;  %v2890_v36 = vld [vmem:[#allocation2 + $0x38] sm:$0xf0]  ;;  %v2543_v37 = vld [vmem:[#allocation2 + $0x80] sm:$0xf]  ;;  %v2516_v39 = vor.u32 %v2892_v31, %v2513_v32  ;;  %vm1030_vm0 = vcmask 261120  }
  0x51   : > { %v2900_v38 = vld [vmem:[#allocation2 + $0x88] sm:$0xf0]  ;;  %v2889_v40 = vld [vmem:[#allocation2 + $0x34] sm:$0xf]  ;;  %v2501_v41 = vld [vmem:[#allocation2 + $0x3c] sm:$0xf0]  ;;  %v2500_v45 = vor.u32 %v2890_v36, %v2499_v33 }
  0x52   : > { %990 = vmatpush.bf16.msra.mxu0 %v2536_v16  ;;  %v2531_v42 = vld [vmem:[#allocation2 + $0x68] sm:$0xf]  ;;  %v2897_v43 = vld [vmem:[#allocation2 + $0x70] sm:$0xf0]  ;;  %v2544_v44 = vor.u32 %v2900_v38, %v2543_v37  ;;  %v2504_v46 = vor.u32 %v2889_v40, %v2501_v41  ;;  %v2487_v47 = vld [vmem:[#allocation2 + $0x18] sm:$0xf] }
  0x53   : > { %1003 = vmatpush.bf16.msra.mxu1 %v2540_v17  ;;  %v2887_v48 = vld [vmem:[#allocation2 + $0x20] sm:$0xf0]  ;;  %v2886_v49 = vld [vmem:[#allocation2 + $0x1c] sm:$0xf]  ;;  %v2489_v50 = vld [vmem:[#allocation2 + $0x24] sm:$0xf0]  ;;  %v2532_v51 = vor.u32 %v2897_v43, %v2531_v42 }
  0x54   : > { %1015 = vmatpush.bf16.msra.mxu2 %v2556_v34  ;;  %s2470_s26 = sshll.u32 %s3701_s29, 3  ;;  %v2488_v52 = vor.u32 %v2887_v48, %v2487_v47  ;;  %v2519_v53 = vld [vmem:[#allocation2 + $0x50] sm:$0xf]  ;;  %v2894_v54 = vld [vmem:[#allocation2 + $0x58] sm:$0xf0]  ;;  %v2492_v55 = vor.u32 %v2886_v49, %v2489_v50  ;;  %s3958_s15 = sld [smem:[#allocation31_spill]] }
  0x55   : > { %v2475_v56 = vld [vmem:[#allocation2] sm:$0xf]  ;;  %v2884_v57 = vld [vmem:[#allocation2 + $0x8] sm:$0xf0]  ;;  %s809_s6 = scalar_lea.vmem %s3957_s25, %s2470_s26  ;;  %v2883_v58 = vld [vmem:[#allocation2 + $0x4] sm:$0xf]  ;;  %v2520_v60 = vor.u32 %v2894_v54, %v2519_v53 }
  0x56   : > { %991 = vmatpush.bf16.msra.mxu0 %v2524_v22  ;;  %v2477_v59 = vld [vmem:[#allocation2 + $0xc] sm:$0xf0]  ;;  %v2476_v61 = vor.u32 %v2884_v57, %v2475_v56  ;;  %v3709_v62 = vld [vmem:[%s809_s6] sm:$0xff]  ;;  %v2507_v63 = vld [vmem:[#allocation2 + $0x38] sm:$0xf]  ;;  %s3452_s8 = smov 64  }
  0x57   : > { %1004 = vmatpush.bf16.msra.mxu1 %v2528_v26  ;;  %v2891_v0 = vld [vmem:[#allocation2 + $0x40] sm:$0xf0]  ;;  %v2480_v1 = vor.u32 %v2883_v58, %v2477_v59  ;;  %v819_v2 = vpack.c.bf16 %v3709_v62, %v3709_v62  ;;  %v2495_v4 = vld [vmem:[#allocation2 + $0x20] sm:$0xf]  ;;  %v2888_v5 = vld [vmem:[#allocation2 + $0x28] sm:$0xf0] }
  0x58   : > { %1016 = vmatpush.bf16.msra.mxu2 %v2544_v44  ;;  %v2508_v3 = vor.u32 %v2891_v0, %v2507_v63  ;;  %v2496_v6 = vor.u32 %v2888_v5, %v2495_v4  ;;  %v2483_v7 = vld [vmem:[#allocation2 + $0x8] sm:$0xf]  ;;  %v2885_v8 = vld [vmem:[#allocation2 + $0x10] sm:$0xf0]  ;;  %s3453_s21 = smov 96   ;;  %s3454_s22 = smov 32  }
  0x59   : > { %v2484_v9 = vor.u32 %v2885_v8, %v2483_v7  ;;  %vm1066_vm1 = vcmask 1043456   ;;  %vm1050_vm2 = vcmask 64512   ;;  %vm1273_vm3 = vcmask 523264   ;;  %s3959_s1 = sld [smem:[#allocation33_spill]]  ;;  %s2878_s27 = sshll.u32 %s3592_s4, 3 }
  0x5a   : > { %992 = vmatpush.bf16.msra.mxu0 %v2512_v35  ;;  %v852_v10 = vld [vmem:[%s3958_s15] sm:$0x7]  ;;  %vm1275_vm4 = vcmask 785408   ;;  %s3960_s5 = sld [smem:[#allocation29_spill]]  ;;  %vm1644_vm9 = vcmask 130048  }
  0x5b   : > { %1005 = vmatpush.bf16.msra.mxu1 %v2516_v39  ;;  %v854_v11 = vperm.slane %v852_v10, 0  ;;  %v855_v12 = vperm.slane %v852_v10, 1  ;;  %v856_v27 = vperm.slane %v852_v10, 2  ;;  %s3962_s29 = sld [smem:[#allocation21_spill]] }
  0x5c   : > { %1017 = vmatpush.bf16.msra.mxu2 %v2532_v51  ;;  %s3963_s20 = sld [smem:[#allocation37_spill]] }
  0x5e   : > { %993 = vmatpush.bf16.msra.mxu0 %v2500_v45 }
  0x5f   : > { %1006 = vmatpush.bf16.msra.mxu1 %v2504_v46 }
  0x60   : > { %1018 = vmatpush.bf16.msra.mxu2 %v2520_v60  ;;  %s814_s23 = scalar_lea.vmem %s3960_s5, %s2470_s26 }
  0x61   : > { %s803_s26 = sand.u32 1, %s3962_s29  }
  0x62   : > { %994 = vmatpush.bf16.msra.mxu0 %v2488_v52  ;;  %s2469_s2 = sshll.u32 %s803_s26, 3  ;;  %s2296_s5 = scalar_lea.sflag [#allocation4], %s803_s26 }
  0x63   : > { %1007 = vmatpush.bf16.msra.mxu1 %v2492_v55  ;;  %s805_s0 = scalar_lea.vmem [#allocation14], %s2469_s2 }
  0x64   : > { %1019 = vmatpush.bf16.msra.mxu2 %v2508_v3  ;;  %s2308_s4 = sshll.u32 %s805_s0, 4  ;;  %s2309_s4 = int_to_ptr.vmem [resolvable:$true] %s2308_s4 }
  0x66   : > { %995 = vmatpush.bf16.msra.mxu0 %v2476_v61 }
  0x67   : > { %1008 = vmatpush.bf16.msra.mxu1 %v2480_v1 }
  0x68   : > { %1020 = vmatpush.bf16.msra.mxu2 %v2496_v6 }
  0x69   : > { %996 = vmatmul.bf16.vlgmr.msra.gmra.mxu0 %v819_v2 }
  0x6a   : > { %1009 = vmatmul.bf16.vlgmr.msra.gmra.mxu1 %v819_v2 }
  0x6c   : > { %1021 = vmatpush.bf16.msra.mxu2 %v2484_v9 }
  0x6f   : > { %1022 = vmatmul.bf16.vlgmr.msra.gmra.mxu2 %v819_v2 }
  0xe6   : > { %v997_v13 = vpop.f32.mrf.mxu0 }
  0xe7   : > { %v1010_v14 = vpop.f32.mrf.mxu1  ;;  %v998_v15 = vadd.f32 %v997_v13, %v854_v11 }
  0xe8   : > { %v1011_v16 = vadd.f32 %v1010_v14, %v855_v12 }
  0xe9   : > { %v1027_v18 = vpack.c.bf16 %v998_v15, %v998_v15 }
  0xea   : > { %v1028_v17 = vpack.c.bf16 %v1011_v16, %v1011_v16 }
  0xeb   : > { %v1084_v24 = vunpack.c.l.b16 %v1027_v18 }
  0xec   : > { %v1089_v19 = vunpack.c.l.b16 %v1028_v17  ;;  %v1035_v20 = vsel %vm1030_vm0, %v1028_v17, 0 }
  0xed   : > { %1044 = vmatpush.bf16.xpose.msra.mxu3 %v1035_v20  ;;  %v1085_v25 = vpack.c.b16 %v1084_v24, %v1084_v24 }
  0xee   : > { %v1090_v21 = vpack.c.b16 %v1089_v19, %v1089_v19  ;;  %v999_v22 = vpop.f32.mrf.mxu0 }
  0xef   : > { %v1012_v23 = vpop.f32.mrf.mxu1 }
  0xf0   : > { %1150 = vrot.lane.b32.xlu2 %v1090_v21, %s3452_s8  ;;  %1091 = vrot.lane.b32.xlu1 %v1090_v21, %s3453_s21 }
  0xf2   : > { %v1023_v26 = vpop.f32.mrf.mxu2 }
  0xf3   : > { %v1024_v28 = vadd.f32 %v1023_v26, %v856_v27 }
  0xf4   : > { %2569 = vmatmul.msk.bf16.vlgmr.msra.gmra.mxu3 %vm1030_vm0, %v1027_v18 }
  0xf5   : > { %v1029_v30 = vpack.c.bf16 %v1024_v28, %v1024_v28 }
  0xf7   : > { %v1068_v31 = vsel %vm1066_vm1, %v1029_v30, 0  ;;  %v1125_v1 = vunpack.c.l.b16 %v1029_v30 }
  0xf8   : > { %1206 = vrot.lane.b32.xlu2 %v1090_v21, %s3454_s22  ;;  %1086 = vrot.lane.b32.xlu1 %v1085_v25, %s3453_s21 }
  0xf9   : > { %1077 = vmatpush.bf16.msrb.mxu3 %v1068_v31  ;;  %v1126_v2 = vpack.c.b16 %v1125_v1, %v1125_v1  ;;  %v2938_v1 = vld [vmem:[#allocation8 + $0x74] sm:$0xf0] }
  0xfa   : > { %v1025_v29 = vpop.f32.mrf.mxu2 }
 0x100   : > { %1204 = vrot.lane.b32.xlu1 %v1085_v25, %s3454_s22 }
 0x14a   : > { %v1151_v32 = vpop.permute.xlu2 %1150 }
 0x14b   : > { %v1156_v33 = vsel %vm1030_vm0, %v1151_v32, 0 }
 0x14c   : > { %1165 = vmatpush.bf16.xpose.msrb.mxu2 %v1156_v33 }
 0x152   : > { %v1207_v47 = vpop.permute.xlu2 %1206 }
 0x153   : > { %v1212_v49 = vsel %vm1030_vm0, %v1207_v47, 0  ;;  %v2909_v47 = vld [vmem:[#allocation5 + $0x10] sm:$0xff] }
 0x162   : > { %v1092_v34 = vpop.permute.xlu1 %1091 }
 0x163   : > { %v1097_v35 = vsel %vm1030_vm0, %v1092_v34, 0 }
 0x164   : > { %1106 = vmatpush.bf16.xpose.msra.mxu3 %v1097_v35 }
 0x16a   : > { %v1087_v51 = vpop.permute.xlu1 %1086 }
 0x172   : > { %v1205_v52 = vpop.permute.xlu1 %1204 }
 0x177   : > { %v1046_v36 = vpop.f32.mrf.mxu3 }
 0x178   : > { %v1051_v37 = vsel %vm1050_vm2, %v1046_v36, -inf }
 0x179   : > { %1052 = vmax.xlane.f32.xlu0 %v1051_v37 }
 0x17f   : > { %v1048_v38 = vpop.f32.mrf.mxu3 }
 0x1ec   : > { %v1053_v39 = vpop.xlane.xlu0 %1052 }
 0x1ed   : > { %v1054_v40 = vsub.f32 %v1046_v36, %v1053_v39 }
 0x1ef   : > { %v1055_v41 = vmul.f32 1.442695, %v1054_v40 }
 0x1f1   : > { %3109 = vpow2.f32 %v1055_v41 }
 0x1f7   : > { %v3110_v42 = vpop.eup %3109 }
 0x1f8   : > { %v1057_v43 = vsel %vm1050_vm2, %v3110_v42, 0.0 }
 0x1f9   : > { %1058 = vadd.xlane.f32.xlu0 %v1057_v43  ;;  %v2913_v43 = vld [vmem:[#allocation5 + $0x30] sm:$0xff] }
 0x20d   : > { %1148 = vrot.lane.b32.xlu0 %v1085_v25, %s3452_s8 }
 0x26c   : > { %v1059_v44 = vpop.xlane.xlu0 %1058 }
 0x26d   : > { %3111 = vrcp.f32 %v1059_v44  ;;  %v2912_v44 = vld [vmem:[#allocation5 + $0x28] sm:$0xff] }
 0x273   : > { %v3112_v45 = vpop.eup %3111 }
 0x274   : > { %v1061_v46 = vmul.f32 %v3112_v45, %v3110_v42  ;;  %v2914_v42 = vld [vmem:[#allocation5 + $0x38] sm:$0xff]  ;;  %v2911_v45 = vld [vmem:[#allocation5 + $0x20] sm:$0xff] }
 0x275   : > { %1346 = vmatpush.bf16.msrb.mxu1 %v2914_v42 }
 0x276   : > { %v1062_v48 = vpack.c.bf16 %v1061_v46, %v1061_v46  ;;  %v2910_v46 = vld [vmem:[#allocation5 + $0x18] sm:$0xff] }
 0x278   : > { %2570 = vmatmul.msk.bf16.vlgmr.msrb.gmra.mxu3 %vm1050_vm2, %v1062_v48  ;;  %v2908_v48 = vld [vmem:[#allocation5 + $0x8] sm:$0xff] }
 0x279   : > { %1221 = vmatpush.bf16.xpose.msrb.mxu3 %v1212_v49  ;;  %1347 = vmatpush.bf16.msrb.mxu1 %v2913_v43  ;;  %v2907_v49 = vld [vmem:[#allocation5] sm:$0xff] }
 0x27d   : > { %1348 = vmatpush.bf16.msrb.mxu1 %v2912_v44 }
 0x27f   : > { %v1149_v50 = vpop.permute.xlu0 %1148 }
 0x280   : > { %2573 = vmatmul.msk.bf16.vlgmr.msrb.gmra.mxu2 %vm1030_vm0, %v1149_v50 }
 0x281   : > { %1349 = vmatpush.bf16.msrb.mxu1 %v2911_v45 }
 0x285   : > { %1350 = vmatpush.bf16.msrb.mxu1 %v2910_v46 }
 0x288   : > { %2571 = vmatmul.msk.bf16.vlgmr.msra.gmra.mxu3 %vm1030_vm0, %v1087_v51 }
 0x289   : > { %1351 = vmatpush.bf16.msrb.mxu1 %v2909_v47 }
 0x28d   : > { %1352 = vmatpush.bf16.msrb.mxu1 %v2908_v48  ;;  %v3777_v48 = vld [vmem:[%s3902_s9] sm:$0x3] }
 0x291   : > { %1353 = vmatpush.bf16.msrb.mxu1 %v2907_v49 }
 0x298   : > { %2575 = vmatmul.msk.bf16.vlgmr.msrb.gmra.mxu3 %vm1030_vm0, %v1205_v52 }
 0x2fb   : > { %v3734_v53 = vpop.f32.mrf.mxu3 }
 0x303   : > { %v1081_v54 = vpop.f32.mrf.mxu3  ;;  %v1167_v55 = vpop.f32.mrf.mxu2 }
 0x304   : > { %v1171_v56 = vsel %vm1050_vm2, %v1167_v55, -inf }
 0x305   : > { %1172 = vmax.xlane.f32.xlu1 %v1171_v56 }
 0x30b   : > { %v1108_v57 = vpop.f32.mrf.mxu3  ;;  %v1169_v58 = vpop.f32.mrf.mxu2 }
 0x30c   : > { %v1112_v59 = vsel %vm1050_vm2, %v1108_v57, -inf  ;;  %v3099_v58 = vld [vmem:[%s3959_s1] ss:$0 sm:$0xff]  ;;  %s3966_s1 = sld [smem:[#allocation38_spill]] }
 0x30d   : > { %1113 = vmax.xlane.f32.xlu2 %v1112_v59 }
 0x313   : > { %v1110_v60 = vpop.f32.mrf.mxu3 }
 0x31b   : > { %v1223_v61 = vpop.f32.mrf.mxu3 }
 0x31c   : > { %v1227_v63 = vsel %vm1050_vm2, %v1223_v61, -inf }
 0x31d   : > { %1228 = vmax.xlane.f32.xlu0 %v1227_v63 }
 0x323   : > { %v1225_v0 = vpop.f32.mrf.mxu3 }
 0x324   : > { %v3455_v0 = vmov 128.0  }
 0x331   : > { %1183 = vrot.lane.b32.xlu0 %v1126_v2, %s3452_s8 }
 0x378   : > { %v1173_v3 = vpop.xlane.xlu1 %1172 }
 0x379   : > { %v1174_v4 = vsub.f32 %v1167_v55, %v1173_v3 }
 0x37b   : > { %v1175_v5 = vmul.f32 1.442695, %v1174_v4  ;;  %v2936_v4 = vld [vmem:[#allocation8 + $0x64] sm:$0xf0] }
 0x37d   : > { %3113 = vpow2.f32 %v1175_v5 }
 0x380   : > { %v1114_v6 = vpop.xlane.xlu2 %1113 }
 0x381   : > { %v1115_v7 = vsub.f32 %v1108_v57, %v1114_v6 }
 0x383   : > { %v3114_v8 = vpop.eup %3113  ;;  %v1116_v9 = vmul.f32 1.442695, %v1115_v7  ;;  %v2687_v7 = vld [vmem:[#allocation8 + $0x50] sm:$0xf] }
 0x384   : > { %v1177_v10 = vsel %vm1050_vm2, %v3114_v8, 0.0 }
 0x385   : > { %3115 = vpow2.f32 %v1116_v9  ;;  %1178 = vadd.xlane.f32.xlu1 %v1177_v10  ;;  %v2922_v9 = vld [vmem:[#allocation7 + $0x38] sm:$0xff] }
 0x38b   : > { %v3116_v11 = vpop.eup %3115 }
 0x38c   : > { %v1118_v12 = vsel %vm1050_vm2, %v3116_v11, 0.0 }
 0x38d   : > { %1119 = vadd.xlane.f32.xlu2 %v1118_v12  ;;  %v2932_v12 = vld [vmem:[#allocation8 + $0x44] sm:$0xf0] }
 0x390   : > { %v1229_v13 = vpop.xlane.xlu0 %1228 }
 0x391   : > { %v1230_v14 = vsub.f32 %v1223_v61, %v1229_v13 }
 0x393   : > { %v1231_v15 = vmul.f32 1.442695, %v1230_v14 }
 0x395   : > { %3117 = vpow2.f32 %v1231_v15  ;;  %v2671_v15 = vld [vmem:[#allocation8 + $0x30] sm:$0xf] }
 0x39b   : > { %v3118_v16 = vpop.eup %3117 }
 0x39c   : > { %v1233_v17 = vsel %vm1050_vm2, %v3118_v16, 0.0 }
 0x39d   : > { %1234 = vadd.xlane.f32.xlu1 %v1233_v17 }
 0x3a3   : > { %v1184_v18 = vpop.permute.xlu0 %1183 }
 0x3a4   : > { %v1189_v19 = vsel %vm1066_vm1, %v1184_v18, 0 }
 0x3a5   : > { %1127 = vrot.lane.b32.xlu2 %v1126_v2, %s3453_s21  ;;  %1198 = vmatpush.bf16.msra.mxu2 %v1189_v19  ;;  %v2663_v19 = vld [vmem:[#allocation8 + $0x20] sm:$0xf] }
 0x3a9   : > { %1466 = vmatpush.bf16.msrb.mxu2 %v2922_v9  ;;  %v3102_v9 = vld [vmem:[%s3900_s7] ss:$0 sm:$0xff] }
 0x3b6   : > { %1239 = vrot.lane.b32.xlu1 %v1126_v2, %s3454_s22  ;;  %v2695_v2 = vld [vmem:[#allocation8 + $0x60] sm:$0xf] }
 0x3b7   : > { %v2696_v5 = vor.u32 %v2936_v4, %v2695_v2 }
 0x3f8   : > { %v1179_v20 = vpop.xlane.xlu1 %1178 }
 0x3f9   : > { %3119 = vrcp.f32 %v1179_v20  ;;  %v2928_v20 = vld [vmem:[#allocation8 + $0x24] sm:$0xf0] }
 0x3ff   : > { %v3120_v21 = vpop.eup %3119 }
 0x400   : > { %v1181_v22 = vmul.f32 %v3120_v21, %v3114_v8  ;;  %v1120_v23 = vpop.xlane.xlu2 %1119  ;;  %v2934_v8 = vld [vmem:[#allocation8 + $0x54] sm:$0xf0] }
 0x401   : > { %3121 = vrcp.f32 %v1120_v23  ;;  %v2655_v23 = vld [vmem:[#allocation8 + $0x10] sm:$0xf] }
 0x402   : > { %v1182_v24 = vpack.c.bf16 %v1181_v22, %v1181_v22  ;;  %v2664_v22 = vor.u32 %v2928_v20, %v2663_v19  ;;  %v2935_v19 = vld [vmem:[#allocation8 + $0x64] sm:$0xf] }
 0x404   : > { %2574 = vmatmul.msk.bf16.vlgmr.msra.gmra.mxu2 %vm1050_vm2, %v1182_v24  ;;  %v2926_v24 = vld [vmem:[#allocation8 + $0x14] sm:$0xf0] }
 0x407   : > { %v3122_v25 = vpop.eup %3121 }
 0x408   : > { %v1122_v26 = vmul.f32 %v3122_v25, %v3116_v11  ;;  %v1128_v27 = vpop.permute.xlu2 %1127  ;;  %v2688_v11 = vor.u32 %v2934_v8, %v2687_v7 }
 0x409   : > { %v1133_v28 = vsel %vm1066_vm1, %v1128_v27, 0  ;;  %v2647_v27 = vld [vmem:[#allocation8] sm:$0xf] }
 0x40a   : > { %1142 = vmatpush.bf16.msrb.mxu0 %v1133_v28  ;;  %v1123_v29 = vpack.c.bf16 %v1122_v26, %v1122_v26  ;;  %v2656_v26 = vor.u32 %v2926_v24, %v2655_v23  ;;  %v2924_v28 = vld [vmem:[#allocation8 + $0x4] sm:$0xf0]  ;;  %v2933_v23 = vld [vmem:[#allocation8 + $0x54] sm:$0xf]  ;;  %v2689_v24 = vld [vmem:[#allocation8 + $0x58] sm:$0xf0] }
 0x40d   : > { %2572 = vmatmul.msk.bf16.vlgmr.msrb.gmra.mxu0 %vm1050_vm2, %v1123_v29 }
 0x410   : > { %v1235_v30 = vpop.xlane.xlu1 %1234 }
 0x411   : > { %3123 = vrcp.f32 %v1235_v30 }
 0x412   : > { %3125 = vrcp.f32 %v3455_v0 }
 0x417   : > { %v3124_v31 = vpop.eup %3123 }
 0x418   : > { %v1237_v32 = vmul.f32 %v3124_v31, %v3118_v16  ;;  %v3126_v6 = vpop.eup %3125  ;;  %v2930_v16 = vld [vmem:[#allocation8 + $0x34] sm:$0xf0]  ;;  %v2648_v31 = vor.u32 %v2924_v28, %v2647_v27  ;;  %v2931_v27 = vld [vmem:[#allocation8 + $0x44] sm:$0xf]  ;;  %v2681_v28 = vld [vmem:[#allocation8 + $0x48] sm:$0xf0] }
 0x419   : > { %v1365_v10 = vmul.f32 128.0, %v3126_v6  ;;  %v2672_v18 = vor.u32 %v2930_v16, %v2671_v15  ;;  %vm1369_vm5 = vweird.f32 %v3126_v6 }
 0x41a   : > { %v1238_v35 = vpack.c.bf16 %v1237_v32, %v1237_v32 }
 0x41b   : > { %v1366_v13 = vsub.f32 1.0, %v1365_v10 }
 0x41d   : > { %v1367_v17 = vmul.f32 %v3126_v6, %v1366_v13 }
 0x41f   : > { %v1368_v21 = vadd.f32 %v3126_v6, %v1367_v17  ;;  %v2937_v17 = vld [vmem:[#allocation8 + $0x74] sm:$0xf] }
 0x421   : > { %v3762_v25 = vsel %vm1369_vm5, %v3126_v6, %v1368_v21  ;;  %v2697_v21 = vld [vmem:[#allocation8 + $0x68] sm:$0xf0] }
 0x428   : > { %v1240_v33 = vpop.permute.xlu1 %1239 }
 0x429   : > { %v1245_v34 = vsel %vm1066_vm1, %v1240_v33, 0 }
 0x42a   : > { %1254 = vmatpush.bf16.msra.mxu0 %v1245_v34  ;;  %v3770_v34 = vld [vmem:[%s814_s23] sm:$0xff]  ;;  %s3961_s23 = sld [smem:[#allocation36_spill]] }
 0x42d   : > { %2576 = vmatmul.msk.bf16.vlgmr.msra.gmra.mxu0 %vm1050_vm2, %v1238_v35  ;;  %v2921_v35 = vld [vmem:[#allocation7 + $0x30] sm:$0xff] }
 0x42e   : > { %1467 = vmatpush.bf16.msrb.mxu2 %v2921_v35  ;;  %v2927_v35 = vld [vmem:[#allocation8 + $0x24] sm:$0xf] }
 0x487   : > { %v1200_v36 = vpop.f32.mrf.mxu2 }
 0x48a   : > { %v1144_v37 = vpop.f32.mrf.mxu0 }
 0x48b   : > { %1261 = vrot.lane.b32.xlu2 %v1144_v37, %s3454_s22  ;;  %v2919_v37 = vld [vmem:[#allocation7 + $0x20] sm:$0xff] }
 0x48f   : > { %v1202_v38 = vpop.f32.mrf.mxu2 }
 0x490   : > { %v2918_v38 = vld [vmem:[#allocation7 + $0x18] sm:$0xff] }
 0x492   : > { %v1146_v39 = vpop.f32.mrf.mxu0 }
 0x493   : > { %1265 = vrot.lane.b32.xlu2 %v1200_v36, %s3452_s8  ;;  %v2920_v36 = vld [vmem:[#allocation7 + $0x28] sm:$0xff]  ;;  %v2917_v39 = vld [vmem:[#allocation7 + $0x10] sm:$0xff] }
 0x494   : > { %1468 = vmatpush.bf16.msrb.mxu2 %v2920_v36  ;;  %v2665_v36 = vld [vmem:[#allocation8 + $0x28] sm:$0xf0] }
 0x498   : > { %1469 = vmatpush.bf16.msrb.mxu2 %v2919_v37  ;;  %v2668_v37 = vor.u32 %v2927_v35, %v2665_v36 }
 0x49c   : > { %1470 = vmatpush.bf16.msrb.mxu2 %v2918_v38  ;;  %v2925_v38 = vld [vmem:[#allocation8 + $0x14] sm:$0xf] }
 0x4a0   : > { %1471 = vmatpush.bf16.msrb.mxu2 %v2917_v39  ;;  %v2657_v39 = vld [vmem:[#allocation8 + $0x18] sm:$0xf0] }
 0x4aa   : > { %v1256_v40 = vpop.f32.mrf.mxu0 }
 0x4ab   : > { %1269 = vrot.lane.b32.xlu0 %v1256_v40, %s3453_s21  ;;  %v2916_v40 = vld [vmem:[#allocation7 + $0x8] sm:$0xff] }
 0x4ac   : > { %1472 = vmatpush.bf16.msrb.mxu2 %v2916_v40 }
 0x4b2   : > { %v1258_v41 = vpop.f32.mrf.mxu0 }
 0x4b3   : > { %v2915_v41 = vld [vmem:[#allocation7] sm:$0xff] }
 0x4b4   : > { %1473 = vmatpush.bf16.msrb.mxu2 %v2915_v41 }
 0x4e5   : > { %v1262_v50 = vpop.permute.xlu2 %1261 }
 0x4e6   : > { %v1272_v52 = vsel %vm1030_vm0, %v3734_v53, %v1262_v50  ;;  %v2703_v53 = vld [vmem:[#allocation8 + $0x70] sm:$0xf]  ;;  %v1497_v50 = vperm.slane %v3777_v48, 0 }
 0x4e7   : > { %v2704_v3 = vor.u32 %v2938_v1, %v2703_v53 }
 0x4e9   : > { %1587 = vmatpush.bf16.msra.mxu3 %v2704_v3 }
 0x4ed   : > { %v1266_v51 = vpop.permute.xlu2 %1265  ;;  %1588 = vmatpush.bf16.msra.mxu3 %v2696_v5 }
 0x4ee   : > { %v1274_v54 = vsel %vm1273_vm3, %v1272_v52, %v1266_v51 }
 0x4f1   : > { %1589 = vmatpush.bf16.msra.mxu3 %v2688_v11 }
 0x51d   : > { %v1270_v55 = vpop.permute.xlu0 %1269 }
 0x51e   : > { %v1276_v56 = vsel %vm1275_vm4, %v1274_v54, %v1270_v55  ;;  %v3100_v55 = vld [vmem:[%s3909_s16] ss:$0 sm:$0xff] }
 0x51f   : > { %v1277_v57 = vpack.c.bf16 %v1276_v56, %v1276_v56 }
 0x521   : > { %1354 = vmatmul.bf16.vlgmr.msrb.gmra.mxu1 %v1277_v57 }
 0x59e   : > { %v1355_v59 = vpop.f32.mrf.mxu1 }
 0x59f   : > { %v1356_v60 = vadd.f32 %v3099_v58, %v1355_v59  ;;  %v3101_v59 = vld [vmem:[%s3910_s17] ss:$0 sm:$0xff] }
 0x5a1   : > { %v1359_v61 = vadd.f32 %v1356_v60, %v3709_v62  ;;  %v2679_v62 = vld [vmem:[#allocation8 + $0x40] sm:$0xf] }
 0x5a2   : > { %v2680_v14 = vor.u32 %v2932_v12, %v2679_v62 }
 0x5a3   : > { %1362 = vadd.xlane.f32.xlu2 %v1359_v61 }
 0x5a4   : > { %1590 = vmatpush.bf16.msra.mxu3 %v2680_v14 }
 0x5a6   : > { %v1357_v63 = vpop.f32.mrf.mxu1 }
 0x5a8   : > { %1591 = vmatpush.bf16.msra.mxu3 %v2672_v18  ;;  %v2705_v18 = vld [vmem:[#allocation8 + $0x78] sm:$0xf0] }
 0x5a9   : > { %v2708_v20 = vor.u32 %v2937_v17, %v2705_v18 }
 0x5ab   : > { %1601 = vmatpush.bf16.msrb.mxu0 %v2708_v20 }
 0x5ac   : > { %1592 = vmatpush.bf16.msra.mxu3 %v2664_v22  ;;  %v2700_v22 = vor.u32 %v2935_v19, %v2697_v21 }
 0x5af   : > { %1602 = vmatpush.bf16.msrb.mxu0 %v2700_v22 }
 0x5b0   : > { %1593 = vmatpush.bf16.msra.mxu3 %v2656_v26  ;;  %v2692_v26 = vor.u32 %v2933_v23, %v2689_v24 }
 0x5b3   : > { %1603 = vmatpush.bf16.msrb.mxu0 %v2692_v26 }
 0x5b4   : > { %1594 = vmatpush.bf16.msra.mxu3 %v2648_v31  ;;  %v2673_v31 = vld [vmem:[#allocation8 + $0x38] sm:$0xf0] }
 0x5b7   : > { %1595 = vmatmul.bf16.vlgmr.msra.gmra.mxu3 %v3770_v34 }
 0x616   : > { %v1363_v29 = vpop.xlane.xlu2 %1362 }
 0x617   : > { %v1371_v30 = vmul.f32 %v3762_v25, %v1363_v29  ;;  %v2684_v29 = vor.u32 %v2931_v27, %v2681_v28 }
 0x619   : > { %v1372_v32 = vsub.f32 %v1359_v61, %v1371_v30  ;;  %v2929_v30 = vld [vmem:[#allocation8 + $0x34] sm:$0xf]  ;;  %1604 = vmatpush.bf16.msrb.mxu0 %v2684_v29 }
 0x61b   : > { %v1373_v33 = vmul.f32 %v1372_v32, %v1372_v32 }
 0x61d   : > { %1374 = vadd.xlane.f32.xlu0 %v1373_v33  ;;  %v2676_v33 = vor.u32 %v2929_v30, %v2673_v31 }
 0x61f   : > { %1605 = vmatpush.bf16.msrb.mxu0 %v2676_v33 }
 0x623   : > { %1606 = vmatpush.bf16.msrb.mxu0 %v2668_v37 }
 0x63a   : > { %v1596_v52 = vpop.f32.mrf.mxu3 }
 0x63b   : > { %v1597_v56 = vadd.f32 %v1596_v52, %v1497_v50 }
 0x63d   : > { %v1616_v61 = vpack.c.bf16 %v1597_v56, %v1597_v56 }
 0x63f   : > { %v1622_v2 = vunpack.c.l.b16 %v1616_v61 }
 0x642   : > { %v1598_v63 = vpop.f32.mrf.mxu3 }
 0x643   : > { %v1599_v53 = vadd.f32 %v1598_v63, %v1497_v50  ;;  %v1498_v63 = vperm.slane %v3777_v48, 1 }
 0x645   : > { %v1617_v3 = vpack.c.bf16 %v1599_v53, %v1599_v53 }
 0x647   : > { %v1623_v4 = vunpack.c.l.b16 %v1617_v3 }
 0x649   : > { %v1624_v5 = vpack.c.b16 %v1623_v4, %v1622_v2 }
 0x64b   : > { %1684 = vrot.lane.b32.xlu1 %v1624_v5, %s3453_s21  ;;  %v1629_v6 = vsel %vm1030_vm0, %v1624_v5, 0 }
 0x64c   : > { %1638 = vmatpush.bf16.xpose.msra.mxu1 %v1629_v6 }
 0x653   : > { %1738 = vrot.lane.b32.xlu1 %v1624_v5, %s3452_s8 }
 0x690   : > { %v1375_v42 = vpop.xlane.xlu0 %1374 }
 0x691   : > { %v1376_v43 = vmul.f32 %v1375_v42, %v3762_v25 }
 0x693   : > { %v1377_v44 = vadd.f32 1e-05, %v1376_v43  ;;  %v2660_v43 = vor.u32 %v2925_v38, %v2657_v39 }
 0x695   : > { %3127 = vrsqrt.f32 %v1377_v44  ;;  %vm1384_vm7 = vweird.f32 %v1377_v44  ;;  %1607 = vmatpush.bf16.msrb.mxu0 %v2660_v43 }
 0x69b   : > { %v3128_v45 = vpop.eup %3127 }
 0x69c   : > { %v1379_v46 = vmul.f32 %v3128_v45, %v1377_v44  ;;  %vm1385_vm6 = vweird.f32 %v3128_v45 }
 0x69d   : > { %vm1386_vm8 = vmor %vm1384_vm7, %vm1385_vm6 }
 0x69e   : > { %v1380_v47 = vmul.f32 %v3128_v45, %v1379_v46  ;;  %v2649_v46 = vld [vmem:[#allocation8 + $0x8] sm:$0xf0] }
 0x6a0   : > { %v1381_v49 = vmul.f32 0.5, %v1380_v47 }
 0x6a2   : > { %v1382_v51 = vsub.f32 1.5, %v1381_v49 }
 0x6a4   : > { %v1383_v54 = vmul.f32 %v3128_v45, %v1382_v51 }
 0x6a6   : > { %v1387_v57 = vsel %vm1386_vm8, %v3128_v45, %v1383_v54  ;;  %v2923_v45 = vld [vmem:[#allocation8 + $0x4] sm:$0xf] }
 0x6a7   : > { %v1388_v58 = vmul.f32 %v1387_v57, %v1372_v32  ;;  %v2652_v47 = vor.u32 %v2923_v45, %v2649_v46 }
 0x6a9   : > { %v1392_v60 = vmul.f32 %v3100_v55, %v1388_v58  ;;  %1608 = vmatpush.bf16.msrb.mxu0 %v2652_v47 }
 0x6ab   : > { %v3786_v0 = vadd.f32 %v3101_v59, %v1392_v60 }
 0x6ac   : > { %1609 = vmatmul.bf16.vlgmr.msrb.gmra.mxu0 %v3770_v34 }
 0x6ad   : > { %v1397_v1 = vpack.c.bf16 %v3786_v0, %v3786_v0 }
 0x6af   : > { %1474 = vmatmul.bf16.vlgmr.msrb.gmra.mxu2 %v1397_v1 }
 0x6bd   : > { %v1685_v7 = vpop.permute.xlu1 %1684 }
 0x6be   : > { %v1690_v8 = vsel %vm1030_vm0, %v1685_v7, 0 }
 0x6bf   : > { %1699 = vmatpush.bf16.xpose.msrb.mxu3 %v1690_v8 }
 0x6c5   : > { %v1739_v15 = vpop.permute.xlu1 %1738 }
 0x6c6   : > { %v1744_v16 = vsel %vm1030_vm0, %v1739_v15, 0 }
 0x6c7   : > { %1753 = vmatpush.bf16.xpose.msrb.mxu1 %v1744_v16 }
 0x729   : > { %v1610_v53 = vpop.f32.mrf.mxu0 }
 0x72a   : > { %v1611_v1 = vadd.f32 %v1610_v53, %v1498_v63  ;;  %v2940_v53 = vld [vmem:[#allocation10 + $0x8] sm:$0xff] }
 0x72c   : > { %v1618_v4 = vpack.c.bf16 %v1611_v1, %v1611_v1  ;;  %v2939_v1 = vld [vmem:[#allocation10] sm:$0xff] }
 0x72e   : > { %v1659_v7 = vunpack.c.l.b16 %v1618_v4 }
 0x732   : > { %v1475_v10 = vpop.f32.mrf.mxu2 }
 0x733   : > { %v1476_v11 = vadd.f32 %v3102_v9, %v1475_v10 }
 0x735   : > { %v1615_v62 = vpack.c.bf16 %v1476_v11, %v1476_v11 }
 0x737   : > { %v1680_v12 = vunpack.c.l.b16 %v1615_v62  ;;  %2709 = vmatmul.msk.bf16.vlgmr.msra.gmra.mxu1 %vm1030_vm0, %v1615_v62 }
 0x739   : > { %v1681_v13 = vpack.c.b16 %v1680_v12, %v1680_v12 }
 0x73a   : > { %v1477_v14 = vpop.f32.mrf.mxu2 }
 0x73b   : > { %1790 = vrot.lane.b32.xlu2 %v1681_v13, %s3454_s22  ;;  %1682 = vrot.lane.b32.xlu1 %v1681_v13, %s3453_s21 }
 0x743   : > { %1792 = vrot.lane.b32.xlu1 %v1624_v5, %s3454_s22  ;;  %v1612_v5 = vpop.f32.mrf.mxu0 }
 0x744   : > { %v1613_v6 = vadd.f32 %v1612_v5, %v1498_v63  ;;  %v2941_v63 = vld [vmem:[#allocation10 + $0x10] sm:$0xff] }
 0x746   : > { %v1619_v8 = vpack.c.bf16 %v1613_v6, %v1613_v6 }
 0x748   : > { %v1660_v10 = vunpack.c.l.b16 %v1619_v8  ;;  %v3103_v8 = vld [vmem:[%s3904_s11] ss:$0 sm:$0xff] }
 0x74a   : > { %v1661_v62 = vpack.c.b16 %v1660_v10, %v1659_v7 }
 0x74b   : > { %1736 = vrot.lane.b32.xlu1 %v1681_v13, %s3452_s8 }
 0x74c   : > { %1673 = vmatpush.bf16.msra.mxu2 %v1661_v62 }
 0x795   : > { %v1791_v50 = vpop.permute.xlu2 %1790 }
 0x7ad   : > { %v1683_v32 = vpop.permute.xlu1 %1682 }
 0x7ae   : > { %2711 = vmatmul.msk.bf16.vlgmr.msrb.gmra.mxu3 %vm1030_vm0, %v1683_v32 }
 0x7b4   : > { %v1640_v40 = vpop.f32.mrf.mxu1 }
 0x7b5   : > { %v1793_v41 = vpop.permute.xlu1 %1792  ;;  %v1645_v42 = vsel %vm1644_vm9, %v1640_v40, -inf }
 0x7b6   : > { %v1798_v44 = vsel %vm1030_vm0, %v1793_v41, 0  ;;  %1646 = vmax.xlane.f32.xlu1 %v1645_v42 }
 0x7b7   : > { %1807 = vmatpush.bf16.xpose.msra.mxu3 %v1798_v44 }
 0x7bc   : > { %v1642_v49 = vpop.f32.mrf.mxu1 }
 0x7bd   : > { %v1737_v51 = vpop.permute.xlu1 %1736 }
 0x7be   : > { %2713 = vmatmul.msk.bf16.vlgmr.msrb.gmra.mxu1 %vm1030_vm0, %v1737_v51  ;;  %2715 = vmatmul.msk.bf16.vlgmr.msra.gmra.mxu3 %vm1030_vm0, %v1791_v50 }
 0x829   : > { %v1647_v52 = vpop.xlane.xlu1 %1646 }
 0x82a   : > { %v1648_v54 = vsub.f32 %v1640_v40, %v1647_v52 }
 0x82c   : > { %v1649_v55 = vmul.f32 1.442695, %v1648_v54 }
 0x82e   : > { %3129 = vpow2.f32 %v1649_v55 }
 0x831   : > { %v1701_v56 = vpop.f32.mrf.mxu3 }
 0x832   : > { %v1705_v3 = vsel %vm1644_vm9, %v1701_v56, -inf }
 0x834   : > { %v3130_v57 = vpop.eup %3129 }
 0x835   : > { %v1651_v58 = vsel %vm1644_vm9, %v3130_v57, 0.0 }
 0x836   : > { %1652 = vadd.xlane.f32.xlu2 %v1651_v58  ;;  %v2945_v58 = vld [vmem:[#allocation10 + $0x30] sm:$0xff] }
 0x839   : > { %v1703_v59 = vpop.f32.mrf.mxu3 }
 0x83a   : > { %v2944_v59 = vld [vmem:[#allocation10 + $0x28] sm:$0xff] }
 0x83b   : > { %v1755_v60 = vpop.f32.mrf.mxu1 }
 0x83c   : > { %v1759_v61 = vsel %vm1644_vm9, %v1755_v60, -inf }
 0x83d   : > { %1760 = vmax.xlane.f32.xlu0 %v1759_v61  ;;  %v2942_v61 = vld [vmem:[#allocation10 + $0x18] sm:$0xff] }
 0x841   : > { %v1809_v2 = vpop.f32.mrf.mxu3 }
 0x842   : > { %v1813_v11 = vsel %vm1644_vm9, %v1809_v2, -inf }
 0x843   : > { %v1757_v34 = vpop.f32.mrf.mxu1 }
 0x845   : > { %1706 = vmax.xlane.f32.xlu0 %v1705_v3 }
 0x849   : > { %v1811_v9 = vpop.f32.mrf.mxu3 }
 0x84d   : > { %1814 = vmax.xlane.f32.xlu0 %v1813_v11 }
 0x861   : > { %1717 = vrot.lane.b32.xlu0 %v1661_v62, %s3453_s21 }
 0x8a9   : > { %v1653_v48 = vpop.xlane.xlu2 %1652 }
 0x8aa   : > { %3131 = vrcp.f32 %v1653_v48  ;;  %v2807_v48 = vld [vmem:[#allocation11 + $0x70] sm:$0xf] }
 0x8b0   : > { %v3132_v12 = vpop.eup %3131  ;;  %v1761_v13 = vpop.xlane.xlu0 %1760 }
 0x8b1   : > { %v1655_v14 = vmul.f32 %v3132_v12, %v3130_v57  ;;  %v1762_v15 = vsub.f32 %v1755_v60, %v1761_v13  ;;  %v2946_v57 = vld [vmem:[#allocation10 + $0x38] sm:$0xff]  ;;  %v2943_v60 = vld [vmem:[#allocation10 + $0x20] sm:$0xff]  ;;  %v2961_v13 = vld [vmem:[#allocation11 + $0x74] sm:$0xf] }
 0x8b2   : > { %1928 = vmatpush.bf16.msra.mxu1 %v2946_v57  ;;  %v2962_v12 = vld [vmem:[#allocation11 + $0x74] sm:$0xf0] }
 0x8b3   : > { %v1656_v16 = vpack.c.bf16 %v1655_v14, %v1655_v14  ;;  %v1763_v17 = vmul.f32 1.442695, %v1762_v15  ;;  %v2808_v14 = vor.u32 %v2962_v12, %v2807_v48  ;;  %v2809_v15 = vld [vmem:[#allocation11 + $0x78] sm:$0xf0] }
 0x8b5   : > { %3133 = vpow2.f32 %v1763_v17  ;;  %2710 = vmatmul.msk.bf16.vlgmr.msra.gmra.mxu2 %vm1644_vm9, %v1656_v16  ;;  %v2812_v16 = vor.u32 %v2961_v13, %v2809_v15  ;;  %v2966_v13 = vld [vmem:[#allocation13 + $0x18] sm:$0xff] }
 0x8b6   : > { %1929 = vmatpush.bf16.msra.mxu1 %v2945_v58  ;;  %v2761_v58 = vld [vmem:[#allocation11 + $0x18] sm:$0xf0] }
 0x8b7   : > { %2088 = vmatpush.bf16.msrb.mxu3 %v2812_v16 }
 0x8b8   : > { %v1707_v18 = vpop.xlane.xlu0 %1706 }
 0x8b9   : > { %v1708_v19 = vsub.f32 %v1701_v56, %v1707_v18 }
 0x8ba   : > { %1930 = vmatpush.bf16.msra.mxu1 %v2944_v59  ;;  %v2751_v59 = vld [vmem:[#allocation11] sm:$0xf] }
 0x8bb   : > { %v3134_v20 = vpop.eup %3133  ;;  %v1709_v21 = vmul.f32 1.442695, %v1708_v19 }
 0x8bc   : > { %v1765_v22 = vsel %vm1644_vm9, %v3134_v20, 0.0 }
 0x8bd   : > { %3135 = vpow2.f32 %v1709_v21  ;;  %1766 = vadd.xlane.f32.xlu1 %v1765_v22  ;;  %v2960_v21 = vld [vmem:[#allocation11 + $0x64] sm:$0xf0]  ;;  %v2959_v22 = vld [vmem:[#allocation11 + $0x64] sm:$0xf] }
 0x8be   : > { %1931 = vmatpush.bf16.msra.mxu1 %v2943_v60  ;;  %v2948_v60 = vld [vmem:[#allocation11 + $0x4] sm:$0xf0] }
 0x8c0   : > { %v1815_v23 = vpop.xlane.xlu0 %1814 }
 0x8c1   : > { %v1816_v24 = vsub.f32 %v1809_v2, %v1815_v23 }
 0x8c2   : > { %1932 = vmatpush.bf16.msra.mxu1 %v2942_v61 }
 0x8c3   : > { %v3136_v26 = vpop.eup %3135  ;;  %v1817_v27 = vmul.f32 1.442695, %v1816_v24  ;;  %v2801_v24 = vld [vmem:[#allocation11 + $0x68] sm:$0xf0] }
 0x8c4   : > { %v1711_v28 = vsel %vm1644_vm9, %v3136_v26, 0.0 }
 0x8c5   : > { %3137 = vpow2.f32 %v1817_v27  ;;  %1712 = vadd.xlane.f32.xlu0 %v1711_v28  ;;  %v2791_v27 = vld [vmem:[#allocation11 + $0x50] sm:$0xf]  ;;  %v2958_v28 = vld [vmem:[#allocation11 + $0x54] sm:$0xf0] }
 0x8c6   : > { %1933 = vmatpush.bf16.msra.mxu1 %v2941_v63  ;;  %v2947_v63 = vld [vmem:[#allocation11 + $0x4] sm:$0xf] }
 0x8ca   : > { %1934 = vmatpush.bf16.msra.mxu1 %v2940_v53  ;;  %v2753_v53 = vld [vmem:[#allocation11 + $0x8] sm:$0xf0] }
 0x8cb   : > { %v3138_v29 = vpop.eup %3137 }
 0x8cc   : > { %v1819_v30 = vsel %vm1644_vm9, %v3138_v29, 0.0 }
 0x8cd   : > { %1820 = vadd.xlane.f32.xlu1 %v1819_v30  ;;  %v2792_v30 = vor.u32 %v2958_v28, %v2791_v27 }
 0x8ce   : > { %1935 = vmatpush.bf16.msra.mxu1 %v2939_v1  ;;  %v2752_v1 = vor.u32 %v2948_v60, %v2751_v59 }
 0x8d3   : > { %v1718_v31 = vpop.permute.xlu0 %1717 }
 0x8d4   : > { %1730 = vmatpush.bf16.msra.mxu0 %v1718_v31  ;;  %v2793_v31 = vld [vmem:[#allocation11 + $0x58] sm:$0xf0] }
 0x8d9   : > { %1771 = vrot.lane.b32.xlu0 %v1661_v62, %s3452_s8 }
 0x8e6   : > { %1825 = vrot.lane.b32.xlu1 %v1661_v62, %s3454_s22 }
 0x930   : > { %v1767_v35 = vpop.xlane.xlu1 %1766 }
 0x938   : > { %v1675_v32 = vpop.f32.mrf.mxu2  ;;  %v1713_v33 = vpop.xlane.xlu0 %1712 }
 0x939   : > { %3139 = vrcp.f32 %v1713_v33  ;;  %v2783_v33 = vld [vmem:[#allocation11 + $0x40] sm:$0xf] }
 0x93a   : > { %3141 = vrcp.f32 %v1767_v35  ;;  %v2956_v35 = vld [vmem:[#allocation11 + $0x44] sm:$0xf0] }
 0x93f   : > { %v3140_v36 = vpop.eup %3139 }
 0x940   : > { %v1715_v37 = vmul.f32 %v3140_v36, %v3136_v26  ;;  %v1677_v38 = vpop.f32.mrf.mxu2  ;;  %v3142_v40 = vpop.eup %3141  ;;  %v2804_v26 = vor.u32 %v2959_v22, %v2801_v24  ;;  %v2955_v36 = vld [vmem:[#allocation11 + $0x44] sm:$0xf]  ;;  %v3105_v24 = vld [vmem:[%s3912_s19] ss:$0 sm:$0xff] }
 0x941   : > { %v1769_v41 = vmul.f32 %v3142_v40, %v3134_v20  ;;  %v1821_v42 = vpop.xlane.xlu1 %1820  ;;  %v2785_v38 = vld [vmem:[#allocation11 + $0x48] sm:$0xf0]  ;;  %v2775_v40 = vld [vmem:[#allocation11 + $0x30] sm:$0xf] }
 0x942   : > { %v1716_v39 = vpack.c.bf16 %v1715_v37, %v1715_v37  ;;  %3143 = vrcp.f32 %v1821_v42  ;;  %2089 = vmatpush.bf16.msrb.mxu3 %v2804_v26  ;;  %v2784_v37 = vor.u32 %v2956_v35, %v2783_v33  ;;  %v2953_v42 = vld [vmem:[#allocation11 + $0x34] sm:$0xf] }
 0x943   : > { %v1770_v44 = vpack.c.bf16 %v1769_v41, %v1769_v41  ;;  %v2954_v41 = vld [vmem:[#allocation11 + $0x34] sm:$0xf0] }
 0x944   : > { %2712 = vmatmul.msk.bf16.vlgmr.msra.gmra.mxu0 %vm1644_vm9, %v1716_v39  ;;  %v2788_v39 = vor.u32 %v2955_v36, %v2785_v38 }
 0x948   : > { %v3144_v45 = vpop.eup %3143 }
 0x949   : > { %v1823_v46 = vmul.f32 %v3144_v45, %v3138_v29  ;;  %v2957_v29 = vld [vmem:[#allocation11 + $0x54] sm:$0xf] }
 0x94b   : > { %v1772_v43 = vpop.permute.xlu0 %1771  ;;  %v1824_v49 = vpack.c.bf16 %v1823_v46, %v1823_v46  ;;  %v2767_v46 = vld [vmem:[#allocation11 + $0x20] sm:$0xf] }
 0x94c   : > { %1784 = vmatpush.bf16.msrb.mxu2 %v1772_v43  ;;  %v2776_v43 = vor.u32 %v2954_v41, %v2775_v40 }
 0x94f   : > { %2714 = vmatmul.msk.bf16.vlgmr.msrb.gmra.mxu2 %vm1644_vm9, %v1770_v44  ;;  %v2777_v44 = vld [vmem:[#allocation11 + $0x38] sm:$0xf0] }
 0x950   : > { %2075 = vmatpush.bf16.msra.mxu2 %v2808_v14  ;;  %v2780_v45 = vor.u32 %v2953_v42, %v2777_v44  ;;  %v2974_v14 = vld [vmem:[#allocation13 + $0x58] sm:$0xff] }
 0x958   : > { %v1826_v47 = vpop.permute.xlu1 %1825 }
 0x959   : > { %1838 = vmatpush.bf16.msrb.mxu0 %v1826_v47  ;;  %v2952_v47 = vld [vmem:[#allocation11 + $0x24] sm:$0xf0] }
 0x95c   : > { %2716 = vmatmul.msk.bf16.vlgmr.msrb.gmra.mxu0 %vm1644_vm9, %v1824_v49  ;;  %v2951_v49 = vld [vmem:[#allocation11 + $0x24] sm:$0xf] }
 0x9c1   : > { %v1732_v50 = vpop.f32.mrf.mxu0 }
 0x9c2   : > { %1845 = vrot.lane.b32.xlu0 %v1732_v50, %s3454_s22  ;;  %v2768_v50 = vor.u32 %v2952_v47, %v2767_v46  ;;  %v3106_v46 = vld [vmem:[%s3961_s23] ss:$0 sm:$0xff] }
 0x9c9   : > { %v1734_v51 = vpop.f32.mrf.mxu0 }
 0x9ca   : > { %v2769_v51 = vld [vmem:[#allocation11 + $0x28] sm:$0xf0] }
 0x9d2   : > { %v1786_v52 = vpop.f32.mrf.mxu2 }
 0x9d3   : > { %1849 = vrot.lane.b32.xlu2 %v1786_v52, %s3452_s8  ;;  %v2772_v52 = vor.u32 %v2951_v49, %v2769_v51  ;;  %s3964_s8 = sld [smem:[#allocation39_spill]] }
 0x9d9   : > { %v1840_v54 = vpop.f32.mrf.mxu0  ;;  %s3379_s6 = scalar_lea.hbm %s3964_s8, 16 }
 0x9da   : > { %1853 = vrot.lane.b32.xlu0 %v1840_v54, %s3453_s21  ;;  %v1788_v55 = vpop.f32.mrf.mxu2  ;;  %v2759_v54 = vld [vmem:[#allocation11 + $0x10] sm:$0xf]  ;;  %s2306_s21 = scalar_lea.hbm %s3964_s8, %s2878_s27 }
 0x9db   : > { %v2950_v55 = vld [vmem:[#allocation11 + $0x14] sm:$0xf0]  ;;  %s2310_s3 = sshll.u32 %s2306_s21, 4  ;;  %s2311_s3 = int_to_ptr.hbm [resolvable:$true] %s2310_s3 }
 0x9dc   : > { %v2760_v57 = vor.u32 %v2950_v55, %v2759_v54  ;;  %s3373_s23 = sshra.s32 %s2311_s3, 4  ;;  %s3374_s23 = int_to_ptr.hbm [resolvable:$true] %s3373_s23 }
 0x9dd   : > { %s3375_s29 = scalar_lea.hbm %s3374_s23, 8  ;;  %p3380_p3 = scmp.lt.s32.totalorder %s3374_s23, %s3964_s8 }
 0x9de   : > { %p3376_p0 = scmp.ne.s32.totalorder %s3374_s23, %s3375_s29  ;;  %p3381_p4 = scmp.lt.s32.totalorder %s3379_s6, %s3375_s29 }
 0x9e0   : > { %p3377_p1 = pnand %p3376_p0, %p3609_p5  ;;  %p3382_p7 = por %p3381_p4, %p3380_p3 }
 0x9e1   : > { %v1842_v56 = vpop.f32.mrf.mxu0 }
 0x9e2   : > { %v2949_v56 = vld [vmem:[#allocation11 + $0x14] sm:$0xf]  ;;  %p3378_p2 = pneg %p3377_p1 }
 0x9e3   : > { %v2764_v61 = vor.u32 %v2949_v56, %v2761_v58 }
 0x9e4   : > { %p3383_p8 = pnand %p3382_p7, %p3378_p2 }
 0xa2d   : > { %v1850_v3 = vpop.permute.xlu2 %1849 }
 0xa34   : > { %v1846_v2 = vpop.permute.xlu0 %1845 }
 0xa35   : > { %v1856_v34 = vsel %vm1030_vm0, %v1675_v32, %v1846_v2  ;;  %v2796_v32 = vor.u32 %v2957_v29, %v2793_v31  ;;  %v2756_v2 = vor.u32 %v2947_v63, %v2753_v53  ;;  %v2964_v29 = vld [vmem:[#allocation13 + $0x8] sm:$0xff]  ;;  %v2963_v31 = vld [vmem:[#allocation13] sm:$0xff] }
 0xa36   : > { %v1857_v4 = vsel %vm1273_vm3, %v1856_v34, %v1850_v3  ;;  %v2970_v34 = vld [vmem:[#allocation13 + $0x38] sm:$0xff] }
 0xa37   : > { %2090 = vmatpush.bf16.msrb.mxu3 %v2796_v32  ;;  %v2978_v3 = vld [vmem:[#allocation13 + $0x78] sm:$0xff]  ;;  %2237 = vmatpush.bf16.msra.mxu0 %v2970_v34  ;;  %v2971_v32 = vld [vmem:[#allocation13 + $0x40] sm:$0xff] }
 0xa38   : > { %2250 = vmatpush.bf16.msrb.mxu1 %v2978_v3 }
 0xa3b   : > { %2091 = vmatpush.bf16.msrb.mxu3 %v2788_v39 }
 0xa3f   : > { %2092 = vmatpush.bf16.msrb.mxu3 %v2780_v45 }
 0xa43   : > { %2093 = vmatpush.bf16.msrb.mxu3 %v2772_v52 }
 0xa47   : > { %2094 = vmatpush.bf16.msrb.mxu3 %v2764_v61 }
 0xa4b   : > { %2095 = vmatpush.bf16.msrb.mxu3 %v2756_v2 }
 0xa4c   : > { %v1854_v5 = vpop.permute.xlu0 %1853 }
 0xa4d   : > { %v1858_v6 = vsel %vm1275_vm4, %v1857_v4, %v1854_v5 }
 0xa4e   : > { %v1859_v7 = vpack.c.bf16 %v1858_v6, %v1858_v6  ;;  %v2969_v6 = vld [vmem:[#allocation13 + $0x30] sm:$0xff] }
 0xa4f   : > { %2238 = vmatpush.bf16.msra.mxu0 %v2969_v6 }
 0xa50   : > { %1936 = vmatmul.bf16.vlgmr.msra.gmra.mxu1 %v1859_v7  ;;  %v2977_v7 = vld [vmem:[#allocation13 + $0x70] sm:$0xff] }
 0xa51   : > { %2251 = vmatpush.bf16.msrb.mxu1 %v2977_v7  ;;  %v3108_v7 = vld [vmem:[%s3966_s1] ss:$0 sm:$0xff] }
 0xacd   : > { %v1937_v9 = vpop.f32.mrf.mxu1 }
 0xace   : > { %v1938_v10 = vadd.f32 %v3103_v8, %v1937_v9  ;;  %v2968_v9 = vld [vmem:[#allocation13 + $0x28] sm:$0xff] }
 0xacf   : > { %2239 = vmatpush.bf16.msra.mxu0 %v2968_v9 }
 0xad0   : > { %v1941_v11 = vadd.f32 %v1938_v10, %v3786_v0  ;;  %v2799_v0 = vld [vmem:[#allocation11 + $0x60] sm:$0xf]  ;;  %v2976_v10 = vld [vmem:[#allocation13 + $0x68] sm:$0xff] }
 0xad1   : > { %v2800_v23 = vor.u32 %v2960_v21, %v2799_v0  ;;  %2252 = vmatpush.bf16.msrb.mxu1 %v2976_v10  ;;  %v3104_v21 = vld [vmem:[%s3911_s18] ss:$0 sm:$0xff] }
 0xad2   : > { %1944 = vadd.xlane.f32.xlu0 %v1941_v11 }
 0xad3   : > { %2076 = vmatpush.bf16.msra.mxu2 %v2800_v23 }
 0xad5   : > { %v1939_v62 = vpop.f32.mrf.mxu1 }
 0xad6   : > { %v2975_v62 = vld [vmem:[#allocation13 + $0x60] sm:$0xff] }
 0xad7   : > { %2077 = vmatpush.bf16.msra.mxu2 %v2792_v30  ;;  %2253 = vmatpush.bf16.msrb.mxu1 %v2975_v62  ;;  %v2972_v30 = vld [vmem:[#allocation13 + $0x48] sm:$0xff] }
 0xadb   : > { %2078 = vmatpush.bf16.msra.mxu2 %v2784_v37  ;;  %2254 = vmatpush.bf16.msrb.mxu1 %v2974_v14 }
 0xadf   : > { %2079 = vmatpush.bf16.msra.mxu2 %v2776_v43 }
 0xae3   : > { %2080 = vmatpush.bf16.msra.mxu2 %v2768_v50 }
 0xae7   : > { %2081 = vmatpush.bf16.msra.mxu2 %v2760_v57 }
 0xaeb   : > { %2082 = vmatpush.bf16.msra.mxu2 %v2752_v1 }
 0xb45   : > { %v1945_v17 = vpop.xlane.xlu0 %1944 }
 0xb46   : > { %v1946_v18 = vmul.f32 %v1945_v17, %v3762_v25  ;;  %v2965_v17 = vld [vmem:[#allocation13 + $0x10] sm:$0xff] }
 0xb48   : > { %v3835_v19 = vsub.f32 %v1941_v11, %v1946_v18  ;;  %v2967_v11 = vld [vmem:[#allocation13 + $0x20] sm:$0xff]  ;;  %v2973_v18 = vld [vmem:[#allocation13 + $0x50] sm:$0xff] }
 0xb49   : > { %2240 = vmatpush.bf16.msra.mxu0 %v2967_v11  ;;  %2255 = vmatpush.bf16.msrb.mxu1 %v2973_v18 }
 0xb4a   : > { %v1948_v20 = vmul.f32 %v3835_v19, %v3835_v19 }
 0xb4c   : > { %1949 = vadd.xlane.f32.xlu1 %v1948_v20 }
 0xb4d   : > { %2241 = vmatpush.bf16.msra.mxu0 %v2966_v13  ;;  %2256 = vmatpush.bf16.msrb.mxu1 %v2972_v30 }
 0xb51   : > { %2242 = vmatpush.bf16.msra.mxu0 %v2965_v17  ;;  %2257 = vmatpush.bf16.msrb.mxu1 %v2971_v32 }
 0xb55   : > { %2243 = vmatpush.bf16.msra.mxu0 %v2964_v29 }
 0xb59   : > { %2244 = vmatpush.bf16.msra.mxu0 %v2963_v31 }
 0xbbf   : > { %v1950_v4 = vpop.xlane.xlu1 %1949 }
 0xbc0   : > { %v1951_v5 = vmul.f32 %v1950_v4, %v3762_v25 }
 0xbc2   : > { %v1952_v8 = vadd.f32 1e-05, %v1951_v5  ;;  %v3107_v5 = vld [vmem:[%s3963_s20] ss:$0 sm:$0xff] }
 0xbc4   : > { %3145 = vrsqrt.f32 %v1952_v8  ;;  %vm1959_vm11 = vweird.f32 %v1952_v8 }
 0xbca   : > { %v3146_v48 = vpop.eup %3145 }
 0xbcb   : > { %v1954_v12 = vmul.f32 %v3146_v48, %v1952_v8  ;;  %vm1960_vm10 = vweird.f32 %v3146_v48 }
 0xbcc   : > { %vm1961_vm12 = vmor %vm1959_vm11, %vm1960_vm10 }
 0xbcd   : > { %v1955_v15 = vmul.f32 %v3146_v48, %v1954_v12 }
 0xbcf   : > { %v1956_v16 = vmul.f32 0.5, %v1955_v15 }
 0xbd1   : > { %v1957_v20 = vsub.f32 1.5, %v1956_v16 }
 0xbd3   : > { %v1958_v0 = vmul.f32 %v3146_v48, %v1957_v20 }
 0xbd5   : > { %v1962_v22 = vsel %vm1961_vm12, %v3146_v48, %v1958_v0 }
 0xbd6   : > { %v1963_v23 = vmul.f32 %v1962_v22, %v3835_v19  ;;  %v1989_v19 = vld [vmem:[%s3906_s13] sm:$0x3] }
 0xbd7   : > { %v1991_v33 = vperm.slane %v1989_v19, 0  ;;  %v1992_v35 = vperm.slane %v1989_v19, 1 }
 0xbd8   : > { %v1967_v26 = vmul.f32 %v3104_v21, %v1963_v23 }
 0xbda   : > { %v1971_v27 = vadd.f32 %v3105_v24, %v1967_v26 }
 0xbdc   : > { %v1972_v28 = vpack.c.bf16 %v1971_v27, %v1971_v27 }
 0xbde   : > { %2083 = vmatmul.bf16.vlgmr.msra.gmra.mxu2 %v1972_v28  ;;  %2096 = vmatmul.bf16.vlgmr.msrb.gmra.mxu3 %v1972_v28 }
 0xc61   : > { %v2084_v36 = vpop.f32.mrf.mxu2  ;;  %v2097_v37 = vpop.f32.mrf.mxu3 }
 0xc62   : > { %v2085_v38 = vadd.f32 %v2084_v36, %v1991_v33  ;;  %v2098_v39 = vadd.f32 %v2097_v37, %v1992_v35 }
 0xc64   : > { %v2101_v40 = vmax.f32 %v2085_v38, 0.0  ;;  %v2102_v41 = vmax.f32 %v2098_v39, 0.0 }
 0xc66   : > { %v2103_v42 = vpack.c.bf16 %v2101_v40, %v2101_v40  ;;  %v2104_v43 = vpack.c.bf16 %v2102_v41, %v2102_v41 }
 0xc68   : > { %2245 = vmatmul.bf16.vlgmr.msra.gmra.mxu0 %v2103_v42  ;;  %2258 = vmatmul.bf16.vlgmr.msrb.gmra.mxu1 %v2104_v43 }
 0xc69   : > { %v2086_v44 = vpop.f32.mrf.mxu2  ;;  %v2099_v45 = vpop.f32.mrf.mxu3 }
 0xce5   : > { %v2246_v47 = vpop.f32.mrf.mxu0  ;;  %v2259_v49 = vpop.f32.mrf.mxu1 }
 0xce6   : > { %v2247_v50 = vadd.f32 %v3106_v46, %v2246_v47 }
 0xce8   : > { %v2260_v51 = vadd.f32 %v2259_v49, %v2247_v50 }
 0xcea   : > { %v2263_v52 = vadd.f32 %v2260_v51, %v1971_v27 }
 0xcec   : > { %2266 = vadd.xlane.f32.xlu2 %v2263_v52 }
 0xced   : > { %v2248_v54 = vpop.f32.mrf.mxu0  ;;  %v2261_v55 = vpop.f32.mrf.mxu1 }
 0xd5f   : > { %v2267_v56 = vpop.xlane.xlu2 %2266 }
 0xd60   : > { %v2268_v57 = vmul.f32 %v2267_v56, %v3762_v25 }
 0xd62   : > { %v2269_v58 = vsub.f32 %v2263_v52, %v2268_v57 }
 0xd64   : > { %v2270_v59 = vmul.f32 %v2269_v58, %v2269_v58 }
 0xd66   : > { %2271 = vadd.xlane.f32.xlu0 %v2270_v59 }
 0xdd9   : > { %v2272_v60 = vpop.xlane.xlu0 %2271 }
 0xdda   : > { %v2273_v61 = vmul.f32 %v2272_v60, %v3762_v25 }
 0xddc   : > { %v2274_v63 = vadd.f32 1e-05, %v2273_v61 }
 0xdde   : > { %3147 = vrsqrt.f32 %v2274_v63  ;;  %vm2281_vm14 = vweird.f32 %v2274_v63 }
 0xde4   : > { %v3148_v53 = vpop.eup %3147 }
 0xde5   : > { %v2276_v1 = vmul.f32 %v3148_v53, %v2274_v63  ;;  %vm2282_vm13 = vweird.f32 %v3148_v53 }
 0xde6   : > { %vm2283_vm15 = vmor %vm2281_vm14, %vm2282_vm13 }
 0xde7   : > { %v2277_v2 = vmul.f32 %v3148_v53, %v2276_v1 }
 0xde9   : > { %v2278_v34 = vmul.f32 0.5, %v2277_v2 }
 0xdeb   : > { %v2279_v3 = vsub.f32 1.5, %v2278_v34 }
 0xded   : > { %v2280_v4 = vmul.f32 %v3148_v53, %v2279_v3 }
 0xdef   : > { %v2284_v25 = vsel %vm2283_vm15, %v3148_v53, %v2280_v4 }
 0xdf0   : > { %v2285_v6 = vmul.f32 %v2284_v25, %v2269_v58 }
 0xdf2   : > { %v2289_v8 = vmul.f32 %v3107_v5, %v2285_v6 }
 0xdf4   : > { %v2293_v9 = vadd.f32 %v3108_v7, %v2289_v8 }
 0xdf6   : > { %2294 = vst [vmem:[%s805_s0] sm:$0xff] %v2293_v9 }
 0xdf7   : > { %3386 = shalt.err (!%p3383_p8)
}
 0xdf8   : > { %3007 = dma.vmem_to_hbm [thread:$0]  (%p3609_p5), %s2309_s4, 128, %s2311_s3, %s2296_s5  }
 0xdf9 PF: > { %s3967_s26 = sld [smem:[#allocation23_spill]] }
 0xdfa   : > { %s3968_s28 = sld [smem:[#allocation20_spill]] }
 0xdff   : > { %p3049_p9 = scmp.ge.s32.totalorder %s3967_s26, 2 }
 0xe00   : > { %s2322_s21 = sand.u32 1, %s3968_s28  }
 0xe01   : > { %p3032_p10 = pnand %p3049_p9, %p3613_p6  ;;  %s2323_s30 = scalar_lea.sflag [#allocation4], %s2322_s21 }
 0xe03   : > { %p3033_p11 = pneg %p3032_p10 }
 0xe05   : > { %3420 = dma.done.wait (%p3033_p11), %s2323_s30, 128  }
 0xe06   : > { %3422 = vsyncadd (%p3033_p11), %s2323_s30, 4294967168  ;;  %s3970_s30 = sld [smem:[#allocation24_spill]] }
 0xe07   : > { %s3971_s3 = sld [smem:[#allocation21_spill]] }
 0xe08   : > { %s3972_s28 = sld [smem:[#allocation22_spill]] }
 0xe09   : > { %s3973_s29 = sld [smem:[#allocation25_spill]] }
 0xe0c   : > { %p36_p12 = scmp.ge.s32.totalorder %s3970_s30, 4  }
 0xe0e   :  { %38 = sbr.rel (!%p36_p12) target bundleno = 20 (0x14), region = 175 }
 0xe13   :  { %2329 = vsyncpa [#allocation3], 1 }
 0xe14   :  { %2331 = vsyncpa [#allocation3 + $0x1], 1 }
 0xe15   :  { %2332 = vsyncpa [#allocation6], 1 }
 0xe16   :  { %2333 = vsyncpa [#allocation9], 1 }
 0xe17   :  { %2334 = vsyncpa [#allocation12], 1 }
 0xe18   :  { %2335 = vsyncpa [#allocation4], 1 }
 0xe19   :  { %2337 = vsyncpa [#allocation4 + $0x1], 1 }

</bundles_post_ra>
